<compile_context>
chip_gen: v6e
topology: v6e:2x2x1
jax: 0.10.0
libtpu: 0.0.40
codegen_flags: <defaults>
</compile_context>

<pallas_src>
import functools

import jax
import jax.numpy as jnp
from jax.experimental import pallas as pl
from jax.experimental.pallas import tpu as pltpu


def _spatial_attention_kernel(x_ref, mask_ref, w_ref, b_ref, o_ref, pad_ref, *,
                              C, H, W, KH, KW, base):
    """One batch element per grid step.

    x_ref:    (1, C, H*W)  VMEM   input image, flattened spatial (lane-dense)
    mask_ref: (KW, H*W)    VMEM   per-horizontal-tap validity mask (constant)
    w_ref:    (2, KH*KW)   SMEM   conv weights, row 0 -> max map, row 1 -> mean map
    b_ref:    (1,)         SMEM   conv bias
    o_ref:    (1, C, H*W)  VMEM   output = input * sigmoid(conv(pool(input)))
    pad_ref:  (2, 2*base+H*W) VMEM scratch: zero-padded flat pooled maps
    """
    HW = H * W
    PH, PW = (KH - 1) // 2, (KW - 1) // 2

    x = x_ref[0]                                           # (C, HW) f32
    ch_max = jnp.max(x, axis=0, keepdims=True)             # (1, HW)
    ch_mean = jnp.sum(x, axis=0, keepdims=True) * (1.0 / C)

    # Zero-padded flat pooled maps (row 0 = channel-max, row 1 = channel-mean).
    pad_ref[...] = jnp.zeros_like(pad_ref)
    pad_ref[0:1, base:base + HW] = ch_max
    pad_ref[1:2, base:base + HW] = ch_mean

    # Direct 7x7 conv on the flat layout: each tap is a statically shifted
    # window; vertical out-of-range hits the zero pad, horizontal row-wrap is
    # killed by the precomputed column mask.
    acc = jnp.zeros((1, HW), jnp.float32)
    for kw in range(KW):                                   # static, unrolled
        dw = kw - PW
        inner = jnp.zeros((1, HW), jnp.float32)
        for kh in range(KH):
            dh = kh - PH
            off = base + dh * W + dw
            k = kh * KW + kw
            win0 = pad_ref[0:1, off:off + HW]              # shifted max map
            win1 = pad_ref[1:2, off:off + HW]              # shifted mean map
            inner = inner + w_ref[0, k] * win0 + w_ref[1, k] * win1
        acc = acc + mask_ref[kw:kw + 1, :] * inner

    att = 1.0 / (1.0 + jnp.exp(-(acc + b_ref[0])))         # sigmoid(conv + bias)
    o_ref[0] = (x * att).astype(o_ref.dtype)               # broadcast over C


def spatial_attention(x_nchw, weight, bias):
    """Forward pass of SpatialAttention (kernel=7, stride=1, padding=3)."""
    N, C, H, W = x_nchw.shape
    cout, cin_pool, KH, KW = weight.shape
    assert cout == 1 and cin_pool == 2, "conv must map the 2 pooled channels -> 1"
    assert KH % 2 == 1 and KW % 2 == 1, "same-padding (odd kernel) only"
    HW = H * W
    PH, PW = (KH - 1) // 2, (KW - 1) // 2

    # Lane-aligned interior offset inside the padded scratch row.
    halo = PH * W + PW
    base = ((halo + 127) // 128) * 128
    pad_w = 2 * base + HW

    x_flat = x_nchw.reshape(N, C, HW).astype(jnp.float32)
    w_flat = weight.reshape(2, KH * KW).astype(jnp.float32)
    b_vec = bias.reshape(1).astype(jnp.float32)

    # Per-horizontal-tap validity mask: mask[kw, p] = 1 iff column (p % W) + kw - PW
    # stays inside the row (removes row-wrap of the flat shifted windows).
    col = jnp.arange(HW, dtype=jnp.int32) % W
    dws = jnp.arange(KW, dtype=jnp.int32)[:, None] - PW
    masks = ((col[None, :] + dws >= 0) & (col[None, :] + dws < W)).astype(jnp.float32)

    kernel = functools.partial(_spatial_attention_kernel,
                               C=C, H=H, W=W, KH=KH, KW=KW, base=base)

    out = pl.pallas_call(
        kernel,
        out_shape=jax.ShapeDtypeStruct((N, C, HW), jnp.float32),
        grid_spec=pltpu.PrefetchScalarGridSpec(
            num_scalar_prefetch=0,
            grid=(N,),
            in_specs=[
                pl.BlockSpec((1, C, HW), lambda n: (n, 0, 0)),          # x
                pl.BlockSpec((KW, HW), lambda n: (0, 0)),               # masks (resident)
                pl.BlockSpec(memory_space=pltpu.MemorySpace.SMEM),      # weights
                pl.BlockSpec(memory_space=pltpu.MemorySpace.SMEM),      # bias
            ],
            out_specs=pl.BlockSpec((1, C, HW), lambda n: (n, 0, 0)),
            scratch_shapes=[pltpu.VMEM((2, pad_w), jnp.float32)],
        ),
        compiler_params=pltpu.CompilerParams(
            dimension_semantics=("parallel",)),
    )(x_flat, masks, w_flat, b_vec)

    return out.reshape(N, C, H, W)


def _reference(x, weight, bias):
    # Plain-JAX reference matching the PyTorch forward.
    mx = jnp.max(x, axis=1, keepdims=True)
    mn = jnp.mean(x, axis=1, keepdims=True)
    pooled = jnp.concatenate([mx, mn], axis=1)                      # (N, 2, H, W)
    pad = (weight.shape[2] - 1) // 2
    z = jax.lax.conv_general_dilated(
        pooled, weight, window_strides=(1, 1),
        padding=[(pad, pad), (pad, pad)],
        dimension_numbers=("NCHW", "OIHW", "NCHW"),
        precision=jax.lax.Precision.HIGHEST)
    att = jax.nn.sigmoid(z + bias[None, :, None, None])             # (N, 1, H, W)
    return x * att


if __name__ == "__main__":
    key = jax.random.PRNGKey(0)
    kx, kw, kb = jax.random.split(key, 3)

    # SpatialAttention(kernel=7, stride=1, padding=3) on a (2, 4, 16, 16) input.
    N, C, H, W = 2, 4, 16, 16
    K = 7

    x = jax.random.normal(kx, (N, C, H, W), dtype=jnp.float32)
    fan_in = 2 * K * K
    weight = jax.random.normal(kw, (1, 2, K, K), dtype=jnp.float32) / jnp.sqrt(fan_in)
    bias = jax.random.normal(kb, (1,), dtype=jnp.float32) * 0.1

    out = spatial_attention(x, weight, bias)
    out = jax.block_until_ready(out)

    ref = _reference(x, weight, bias)
    assert out.shape == (N, C, H, W)
    assert jnp.allclose(out, ref, rtol=1e-3, atol=1e-3), float(jnp.max(jnp.abs(out - ref)))

    print("KERNEL_OK")
</pallas_src>

<mosaic_0001>
module attributes {stable_mosaic.version = 11 : i64} {
  func.func @_spatial_attention_kernel(%arg0: i32, %arg1: memref<1x4x256xf32, #tpu.memory_space<vmem>>, %arg2: memref<7x256xf32, #tpu.memory_space<vmem>>, %arg3: memref<2x49xf32, #tpu.memory_space<smem>>, %arg4: memref<1xf32, #tpu.memory_space<smem>>, %arg5: memref<1x4x256xf32, #tpu.memory_space<vmem>>, %arg6: memref<2x512xf32, #tpu.memory_space<vmem>>) attributes {dimension_semantics = [#tpu.dimension_semantics<parallel>], iteration_bounds = array<i64: 2>, scalar_prefetch = 0 : i64, scratch_operands = 1 : i64, tpu.core_type = #tpu.core_type<tc>, window_params = [{transform_indices = @transform_0, window_bounds = array<i64: 1, 4, 256>}, {pipeline_mode = #tpu.pipeline_mode<synchronous>, transform_indices = @transform_1, window_bounds = array<i64: 7, 256>}, {transform_indices = @transform_2, window_bounds = array<i64: 2, 49>}, {transform_indices = @transform_3, window_bounds = array<i64: 1>}, {transform_indices = @transform_4, window_bounds = array<i64: 1, 4, 256>}]} {
    %c0 = arith.constant 0 : index
    %c0_0 = arith.constant 0 : index
    %c0_1 = arith.constant 0 : index
    %0 = vector.load %arg1[%c0, %c0_0, %c0_1] : memref<1x4x256xf32, #tpu.memory_space<vmem>>, vector<1x4x256xf32>
    %1 = vector.shape_cast %0 : vector<1x4x256xf32> to vector<4x256xf32>
    %cst = arith.constant dense<0xFF800000> : vector<256xf32>
    %2 = vector.multi_reduction <maximumf>, %1, %cst [0] : vector<4x256xf32> to vector<256xf32>
    %3 = vector.shape_cast %2 : vector<256xf32> to vector<1x256xf32>
    %cst_2 = arith.constant dense<0.000000e+00> : vector<256xf32>
    %4 = vector.multi_reduction <add>, %1, %cst_2 [0] : vector<4x256xf32> to vector<256xf32>
    %5 = vector.shape_cast %4 : vector<256xf32> to vector<1x256xf32>
    %cst_3 = arith.constant 2.500000e-01 : f32
    %6 = vector.broadcast %cst_3 : f32 to vector<1x256xf32>
    %7 = arith.mulf %5, %6 : vector<1x256xf32>
    %cst_4 = arith.constant 0.000000e+00 : f32
    %8 = vector.broadcast %cst_4 : f32 to vector<2x512xf32>
    %c0_5 = arith.constant 0 : index
    %c0_6 = arith.constant 0 : index
    %9 = vector.load %arg6[%c0_5, %c0_6] : memref<2x512xf32, #tpu.memory_space<vmem>>, vector<2x512xf32>
    tpu.vector_store %arg6[%c0_5, %c0_6], %8 {strides = array<i32>} : memref<2x512xf32, #tpu.memory_space<vmem>>, vector<2x512xf32>,
    %c0_7 = arith.constant 0 : index
    %c128 = arith.constant 128 : index
    %10 = vector.load %arg6[%c0_7, %c128] : memref<2x512xf32, #tpu.memory_space<vmem>>, vector<1x256xf32>
    tpu.vector_store %arg6[%c0_7, %c128], %3 {strides = array<i32>} : memref<2x512xf32, #tpu.memory_space<vmem>>, vector<1x256xf32>,
    %c1 = arith.constant 1 : index
    %c128_8 = arith.constant 128 : index
    %11 = vector.load %arg6[%c1, %c128_8] : memref<2x512xf32, #tpu.memory_space<vmem>>, vector<1x256xf32>
    tpu.vector_store %arg6[%c1, %c128_8], %7 {strides = array<i32>} : memref<2x512xf32, #tpu.memory_space<vmem>>, vector<1x256xf32>,
    %cst_9 = arith.constant 0.000000e+00 : f32
    %12 = vector.broadcast %cst_9 : f32 to vector<1x256xf32>
    %cst_10 = arith.constant 0.000000e+00 : f32
    %13 = vector.broadcast %cst_10 : f32 to vector<1x256xf32>
    %c0_11 = arith.constant 0 : index
    %c77 = arith.constant 77 : index
    %14 = vector.load %arg6[%c0_11, %c77] : memref<2x512xf32, #tpu.memory_space<vmem>>, vector<1x256xf32>
    %c1_12 = arith.constant 1 : index
    %c77_13 = arith.constant 77 : index
    %15 = vector.load %arg6[%c1_12, %c77_13] : memref<2x512xf32, #tpu.memory_space<vmem>>, vector<1x256xf32>
    %c0_14 = arith.constant 0 : index
    %c0_15 = arith.constant 0 : index
    %16 = memref.load %arg3[%c0_14, %c0_15] : memref<2x49xf32, #tpu.memory_space<smem>>
    %17 = vector.broadcast %16 : f32 to vector<1x256xf32>
    %18 = arith.mulf %17, %14 : vector<1x256xf32>
    %19 = arith.addf %13, %18 : vector<1x256xf32>
    %c1_16 = arith.constant 1 : index
    %c0_17 = arith.constant 0 : index
    %20 = memref.load %arg3[%c1_16, %c0_17] : memref<2x49xf32, #tpu.memory_space<smem>>
    %21 = vector.broadcast %20 : f32 to vector<1x256xf32>
    %22 = arith.mulf %21, %15 : vector<1x256xf32>
    %23 = arith.addf %19, %22 : vector<1x256xf32>
    %c0_18 = arith.constant 0 : index
    %c93 = arith.constant 93 : index
    %24 = vector.load %arg6[%c0_18, %c93] : memref<2x512xf32, #tpu.memory_space<vmem>>, vector<1x256xf32>
    %c1_19 = arith.constant 1 : index
    %c93_20 = arith.constant 93 : index
    %25 = vector.load %arg6[%c1_19, %c93_20] : memref<2x512xf32, #tpu.memory_space<vmem>>, vector<1x256xf32>
    %c0_21 = arith.constant 0 : index
    %c7 = arith.constant 7 : index
    %26 = memref.load %arg3[%c0_21, %c7] : memref<2x49xf32, #tpu.memory_space<smem>>
    %27 = vector.broadcast %26 : f32 to vector<1x256xf32>
    %28 = arith.mulf %27, %24 : vector<1x256xf32>
    %29 = arith.addf %23, %28 : vector<1x256xf32>
    %c1_22 = arith.constant 1 : index
    %c7_23 = arith.constant 7 : index
    %30 = memref.load %arg3[%c1_22, %c7_23] : memref<2x49xf32, #tpu.memory_space<smem>>
    %31 = vector.broadcast %30 : f32 to vector<1x256xf32>
    %32 = arith.mulf %31, %25 : vector<1x256xf32>
    %33 = arith.addf %29, %32 : vector<1x256xf32>
    %c0_24 = arith.constant 0 : index
    %c109 = arith.constant 109 : index
    %34 = vector.load %arg6[%c0_24, %c109] : memref<2x512xf32, #tpu.memory_space<vmem>>, vector<1x256xf32>
    %c1_25 = arith.constant 1 : index
    %c109_26 = arith.constant 109 : index
    %35 = vector.load %arg6[%c1_25, %c109_26] : memref<2x512xf32, #tpu.memory_space<vmem>>, vector<1x256xf32>
    %c0_27 = arith.constant 0 : index
    %c14 = arith.constant 14 : index
    %36 = memref.load %arg3[%c0_27, %c14] : memref<2x49xf32, #tpu.memory_space<smem>>
    %37 = vector.broadcast %36 : f32 to vector<1x256xf32>
    %38 = arith.mulf %37, %34 : vector<1x256xf32>
    %39 = arith.addf %33, %38 : vector<1x256xf32>
    %c1_28 = arith.constant 1 : index
    %c14_29 = arith.constant 14 : index
    %40 = memref.load %arg3[%c1_28, %c14_29] : memref<2x49xf32, #tpu.memory_space<smem>>
    %41 = vector.broadcast %40 : f32 to vector<1x256xf32>
    %42 = arith.mulf %41, %35 : vector<1x256xf32>
    %43 = arith.addf %39, %42 : vector<1x256xf32>
    %c0_30 = arith.constant 0 : index
    %c125 = arith.constant 125 : index
    %44 = vector.load %arg6[%c0_30, %c125] : memref<2x512xf32, #tpu.memory_space<vmem>>, vector<1x256xf32>
    %c1_31 = arith.constant 1 : index
    %c125_32 = arith.constant 125 : index
    %45 = vector.load %arg6[%c1_31, %c125_32] : memref<2x512xf32, #tpu.memory_space<vmem>>, vector<1x256xf32>
    %c0_33 = arith.constant 0 : index
    %c21 = arith.constant 21 : index
    %46 = memref.load %arg3[%c0_33, %c21] : memref<2x49xf32, #tpu.memory_space<smem>>
    %47 = vector.broadcast %46 : f32 to vector<1x256xf32>
    %48 = arith.mulf %47, %44 : vector<1x256xf32>
    %49 = arith.addf %43, %48 : vector<1x256xf32>
    %c1_34 = arith.constant 1 : index
    %c21_35 = arith.constant 21 : index
    %50 = memref.load %arg3[%c1_34, %c21_35] : memref<2x49xf32, #tpu.memory_space<smem>>
    %51 = vector.broadcast %50 : f32 to vector<1x256xf32>
    %52 = arith.mulf %51, %45 : vector<1x256xf32>
    %53 = arith.addf %49, %52 : vector<1x256xf32>
    %c0_36 = arith.constant 0 : index
    %c141 = arith.constant 141 : index
    %54 = vector.load %arg6[%c0_36, %c141] : memref<2x512xf32, #tpu.memory_space<vmem>>, vector<1x256xf32>
    %c1_37 = arith.constant 1 : index
    %c141_38 = arith.constant 141 : index
    %55 = vector.load %arg6[%c1_37, %c141_38] : memref<2x512xf32, #tpu.memory_space<vmem>>, vector<1x256xf32>
    %c0_39 = arith.constant 0 : index
    %c28 = arith.constant 28 : index
    %56 = memref.load %arg3[%c0_39, %c28] : memref<2x49xf32, #tpu.memory_space<smem>>
    %57 = vector.broadcast %56 : f32 to vector<1x256xf32>
    %58 = arith.mulf %57, %54 : vector<1x256xf32>
    %59 = arith.addf %53, %58 : vector<1x256xf32>
    %c1_40 = arith.constant 1 : index
    %c28_41 = arith.constant 28 : index
    %60 = memref.load %arg3[%c1_40, %c28_41] : memref<2x49xf32, #tpu.memory_space<smem>>
    %61 = vector.broadcast %60 : f32 to vector<1x256xf32>
    %62 = arith.mulf %61, %55 : vector<1x256xf32>
    %63 = arith.addf %59, %62 : vector<1x256xf32>
    %c0_42 = arith.constant 0 : index
    %c157 = arith.constant 157 : index
    %64 = vector.load %arg6[%c0_42, %c157] : memref<2x512xf32, #tpu.memory_space<vmem>>, vector<1x256xf32>
    %c1_43 = arith.constant 1 : index
    %c157_44 = arith.constant 157 : index
    %65 = vector.load %arg6[%c1_43, %c157_44] : memref<2x512xf32, #tpu.memory_space<vmem>>, vector<1x256xf32>
    %c0_45 = arith.constant 0 : index
    %c35 = arith.constant 35 : index
    %66 = memref.load %arg3[%c0_45, %c35] : memref<2x49xf32, #tpu.memory_space<smem>>
    %67 = vector.broadcast %66 : f32 to vector<1x256xf32>
    %68 = arith.mulf %67, %64 : vector<1x256xf32>
    %69 = arith.addf %63, %68 : vector<1x256xf32>
    %c1_46 = arith.constant 1 : index
    %c35_47 = arith.constant 35 : index
    %70 = memref.load %arg3[%c1_46, %c35_47] : memref<2x49xf32, #tpu.memory_space<smem>>
    %71 = vector.broadcast %70 : f32 to vector<1x256xf32>
    %72 = arith.mulf %71, %65 : vector<1x256xf32>
    %73 = arith.addf %69, %72 : vector<1x256xf32>
    %c0_48 = arith.constant 0 : index
    %c173 = arith.constant 173 : index
    %74 = vector.load %arg6[%c0_48, %c173] : memref<2x512xf32, #tpu.memory_space<vmem>>, vector<1x256xf32>
    %c1_49 = arith.constant 1 : index
    %c173_50 = arith.constant 173 : index
    %75 = vector.load %arg6[%c1_49, %c173_50] : memref<2x512xf32, #tpu.memory_space<vmem>>, vector<1x256xf32>
    %c0_51 = arith.constant 0 : index
    %c42 = arith.constant 42 : index
    %76 = memref.load %arg3[%c0_51, %c42] : memref<2x49xf32, #tpu.memory_space<smem>>
    %77 = vector.broadcast %76 : f32 to vector<1x256xf32>
    %78 = arith.mulf %77, %74 : vector<1x256xf32>
    %79 = arith.addf %73, %78 : vector<1x256xf32>
    %c1_52 = arith.constant 1 : index
    %c42_53 = arith.constant 42 : index
    %80 = memref.load %arg3[%c1_52, %c42_53] : memref<2x49xf32, #tpu.memory_space<smem>>
    %81 = vector.broadcast %80 : f32 to vector<1x256xf32>
    %82 = arith.mulf %81, %75 : vector<1x256xf32>
    %83 = arith.addf %79, %82 : vector<1x256xf32>
    %c0_54 = arith.constant 0 : index
    %c0_55 = arith.constant 0 : index
    %84 = vector.load %arg2[%c0_54, %c0_55] : memref<7x256xf32, #tpu.memory_space<vmem>>, vector<1x256xf32>
    %85 = arith.mulf %84, %83 : vector<1x256xf32>
    %86 = arith.addf %12, %85 : vector<1x256xf32>
    %cst_56 = arith.constant 0.000000e+00 : f32
    %87 = vector.broadcast %cst_56 : f32 to vector<1x256xf32>
    %c0_57 = arith.constant 0 : index
    %c78 = arith.constant 78 : index
    %88 = vector.load %arg6[%c0_57, %c78] : memref<2x512xf32, #tpu.memory_space<vmem>>, vector<1x256xf32>
    %c1_58 = arith.constant 1 : index
    %c78_59 = arith.constant 78 : index
    %89 = vector.load %arg6[%c1_58, %c78_59] : memref<2x512xf32, #tpu.memory_space<vmem>>, vector<1x256xf32>
    %c0_60 = arith.constant 0 : index
    %c1_61 = arith.constant 1 : index
    %90 = memref.load %arg3[%c0_60, %c1_61] : memref<2x49xf32, #tpu.memory_space<smem>>
    %91 = vector.broadcast %90 : f32 to vector<1x256xf32>
    %92 = arith.mulf %91, %88 : vector<1x256xf32>
    %93 = arith.addf %87, %92 : vector<1x256xf32>
    %c1_62 = arith.constant 1 : index
    %c1_63 = arith.constant 1 : index
    %94 = memref.load %arg3[%c1_62, %c1_63] : memref<2x49xf32, #tpu.memory_space<smem>>
    %95 = vector.broadcast %94 : f32 to vector<1x256xf32>
    %96 = arith.mulf %95, %89 : vector<1x256xf32>
    %97 = arith.addf %93, %96 : vector<1x256xf32>
    %c0_64 = arith.constant 0 : index
    %c94 = arith.constant 94 : index
    %98 = vector.load %arg6[%c0_64, %c94] : memref<2x512xf32, #tpu.memory_space<vmem>>, vector<1x256xf32>
    %c1_65 = arith.constant 1 : index
    %c94_66 = arith.constant 94 : index
    %99 = vector.load %arg6[%c1_65, %c94_66] : memref<2x512xf32, #tpu.memory_space<vmem>>, vector<1x256xf32>
    %c0_67 = arith.constant 0 : index
    %c8 = arith.constant 8 : index
    %100 = memref.load %arg3[%c0_67, %c8] : memref<2x49xf32, #tpu.memory_space<smem>>
    %101 = vector.broadcast %100 : f32 to vector<1x256xf32>
    %102 = arith.mulf %101, %98 : vector<1x256xf32>
    %103 = arith.addf %97, %102 : vector<1x256xf32>
    %c1_68 = arith.constant 1 : index
    %c8_69 = arith.constant 8 : index
    %104 = memref.load %arg3[%c1_68, %c8_69] : memref<2x49xf32, #tpu.memory_space<smem>>
    %105 = vector.broadcast %104 : f32 to vector<1x256xf32>
    %106 = arith.mulf %105, %99 : vector<1x256xf32>
    %107 = arith.addf %103, %106 : vector<1x256xf32>
    %c0_70 = arith.constant 0 : index
    %c110 = arith.constant 110 : index
    %108 = vector.load %arg6[%c0_70, %c110] : memref<2x512xf32, #tpu.memory_space<vmem>>, vector<1x256xf32>
    %c1_71 = arith.constant 1 : index
    %c110_72 = arith.constant 110 : index
    %109 = vector.load %arg6[%c1_71, %c110_72] : memref<2x512xf32, #tpu.memory_space<vmem>>, vector<1x256xf32>
    %c0_73 = arith.constant 0 : index
    %c15 = arith.constant 15 : index
    %110 = memref.load %arg3[%c0_73, %c15] : memref<2x49xf32, #tpu.memory_space<smem>>
    %111 = vector.broadcast %110 : f32 to vector<1x256xf32>
    %112 = arith.mulf %111, %108 : vector<1x256xf32>
    %113 = arith.addf %107, %112 : vector<1x256xf32>
    %c1_74 = arith.constant 1 : index
    %c15_75 = arith.constant 15 : index
    %114 = memref.load %arg3[%c1_74, %c15_75] : memref<2x49xf32, #tpu.memory_space<smem>>
    %115 = vector.broadcast %114 : f32 to vector<1x256xf32>
    %116 = arith.mulf %115, %109 : vector<1x256xf32>
    %117 = arith.addf %113, %116 : vector<1x256xf32>
    %c0_76 = arith.constant 0 : index
    %c126 = arith.constant 126 : index
    %118 = vector.load %arg6[%c0_76, %c126] : memref<2x512xf32, #tpu.memory_space<vmem>>, vector<1x256xf32>
    %c1_77 = arith.constant 1 : index
    %c126_78 = arith.constant 126 : index
    %119 = vector.load %arg6[%c1_77, %c126_78] : memref<2x512xf32, #tpu.memory_space<vmem>>, vector<1x256xf32>
    %c0_79 = arith.constant 0 : index
    %c22 = arith.constant 22 : index
    %120 = memref.load %arg3[%c0_79, %c22] : memref<2x49xf32, #tpu.memory_space<smem>>
    %121 = vector.broadcast %120 : f32 to vector<1x256xf32>
    %122 = arith.mulf %121, %118 : vector<1x256xf32>
    %123 = arith.addf %117, %122 : vector<1x256xf32>
    %c1_80 = arith.constant 1 : index
    %c22_81 = arith.constant 22 : index
    %124 = memref.load %arg3[%c1_80, %c22_81] : memref<2x49xf32, #tpu.memory_space<smem>>
    %125 = vector.broadcast %124 : f32 to vector<1x256xf32>
    %126 = arith.mulf %125, %119 : vector<1x256xf32>
    %127 = arith.addf %123, %126 : vector<1x256xf32>
    %c0_82 = arith.constant 0 : index
    %c142 = arith.constant 142 : index
    %128 = vector.load %arg6[%c0_82, %c142] : memref<2x512xf32, #tpu.memory_space<vmem>>, vector<1x256xf32>
    %c1_83 = arith.constant 1 : index
    %c142_84 = arith.constant 142 : index
    %129 = vector.load %arg6[%c1_83, %c142_84] : memref<2x512xf32, #tpu.memory_space<vmem>>, vector<1x256xf32>
    %c0_85 = arith.constant 0 : index
    %c29 = arith.constant 29 : index
    %130 = memref.load %arg3[%c0_85, %c29] : memref<2x49xf32, #tpu.memory_space<smem>>
    %131 = vector.broadcast %130 : f32 to vector<1x256xf32>
    %132 = arith.mulf %131, %128 : vector<1x256xf32>
    %133 = arith.addf %127, %132 : vector<1x256xf32>
    %c1_86 = arith.constant 1 : index
    %c29_87 = arith.constant 29 : index
    %134 = memref.load %arg3[%c1_86, %c29_87] : memref<2x49xf32, #tpu.memory_space<smem>>
    %135 = vector.broadcast %134 : f32 to vector<1x256xf32>
    %136 = arith.mulf %135, %129 : vector<1x256xf32>
    %137 = arith.addf %133, %136 : vector<1x256xf32>
    %c0_88 = arith.constant 0 : index
    %c158 = arith.constant 158 : index
    %138 = vector.load %arg6[%c0_88, %c158] : memref<2x512xf32, #tpu.memory_space<vmem>>, vector<1x256xf32>
    %c1_89 = arith.constant 1 : index
    %c158_90 = arith.constant 158 : index
    %139 = vector.load %arg6[%c1_89, %c158_90] : memref<2x512xf32, #tpu.memory_space<vmem>>, vector<1x256xf32>
    %c0_91 = arith.constant 0 : index
    %c36 = arith.constant 36 : index
    %140 = memref.load %arg3[%c0_91, %c36] : memref<2x49xf32, #tpu.memory_space<smem>>
    %141 = vector.broadcast %140 : f32 to vector<1x256xf32>
    %142 = arith.mulf %141, %138 : vector<1x256xf32>
    %143 = arith.addf %137, %142 : vector<1x256xf32>
    %c1_92 = arith.constant 1 : index
    %c36_93 = arith.constant 36 : index
    %144 = memref.load %arg3[%c1_92, %c36_93] : memref<2x49xf32, #tpu.memory_space<smem>>
    %145 = vector.broadcast %144 : f32 to vector<1x256xf32>
    %146 = arith.mulf %145, %139 : vector<1x256xf32>
    %147 = arith.addf %143, %146 : vector<1x256xf32>
    %c0_94 = arith.constant 0 : index
    %c174 = arith.constant 174 : index
    %148 = vector.load %arg6[%c0_94, %c174] : memref<2x512xf32, #tpu.memory_space<vmem>>, vector<1x256xf32>
    %c1_95 = arith.constant 1 : index
    %c174_96 = arith.constant 174 : index
    %149 = vector.load %arg6[%c1_95, %c174_96] : memref<2x512xf32, #tpu.memory_space<vmem>>, vector<1x256xf32>
    %c0_97 = arith.constant 0 : index
    %c43 = arith.constant 43 : index
    %150 = memref.load %arg3[%c0_97, %c43] : memref<2x49xf32, #tpu.memory_space<smem>>
    %151 = vector.broadcast %150 : f32 to vector<1x256xf32>
    %152 = arith.mulf %151, %148 : vector<1x256xf32>
    %153 = arith.addf %147, %152 : vector<1x256xf32>
    %c1_98 = arith.constant 1 : index
    %c43_99 = arith.constant 43 : index
    %154 = memref.load %arg3[%c1_98, %c43_99] : memref<2x49xf32, #tpu.memory_space<smem>>
    %155 = vector.broadcast %154 : f32 to vector<1x256xf32>
    %156 = arith.mulf %155, %149 : vector<1x256xf32>
    %157 = arith.addf %153, %156 : vector<1x256xf32>
    %c1_100 = arith.constant 1 : index
    %c0_101 = arith.constant 0 : index
    %158 = vector.load %arg2[%c1_100, %c0_101] : memref<7x256xf32, #tpu.memory_space<vmem>>, vector<1x256xf32>
    %159 = arith.mulf %158, %157 : vector<1x256xf32>
    %160 = arith.addf %86, %159 : vector<1x256xf32>
    %cst_102 = arith.constant 0.000000e+00 : f32
    %161 = vector.broadcast %cst_102 : f32 to vector<1x256xf32>
    %c0_103 = arith.constant 0 : index
    %c79 = arith.constant 79 : index
    %162 = vector.load %arg6[%c0_103, %c79] : memref<2x512xf32, #tpu.memory_space<vmem>>, vector<1x256xf32>
    %c1_104 = arith.constant 1 : index
    %c79_105 = arith.constant 79 : index
    %163 = vector.load %arg6[%c1_104, %c79_105] : memref<2x512xf32, #tpu.memory_space<vmem>>, vector<1x256xf32>
    %c0_106 = arith.constant 0 : index
    %c2 = arith.constant 2 : index
    %164 = memref.load %arg3[%c0_106, %c2] : memref<2x49xf32, #tpu.memory_space<smem>>
    %165 = vector.broadcast %164 : f32 to vector<1x256xf32>
    %166 = arith.mulf %165, %162 : vector<1x256xf32>
    %167 = arith.addf %161, %166 : vector<1x256xf32>
    %c1_107 = arith.constant 1 : index
    %c2_108 = arith.constant 2 : index
    %168 = memref.load %arg3[%c1_107, %c2_108] : memref<2x49xf32, #tpu.memory_space<smem>>
    %169 = vector.broadcast %168 : f32 to vector<1x256xf32>
    %170 = arith.mulf %169, %163 : vector<1x256xf32>
    %171 = arith.addf %167, %170 : vector<1x256xf32>
    %c0_109 = arith.constant 0 : index
    %c95 = arith.constant 95 : index
    %172 = vector.load %arg6[%c0_109, %c95] : memref<2x512xf32, #tpu.memory_space<vmem>>, vector<1x256xf32>
    %c1_110 = arith.constant 1 : index
    %c95_111 = arith.constant 95 : index
    %173 = vector.load %arg6[%c1_110, %c95_111] : memref<2x512xf32, #tpu.memory_space<vmem>>, vector<1x256xf32>
    %c0_112 = arith.constant 0 : index
    %c9 = arith.constant 9 : index
    %174 = memref.load %arg3[%c0_112, %c9] : memref<2x49xf32, #tpu.memory_space<smem>>
    %175 = vector.broadcast %174 : f32 to vector<1x256xf32>
    %176 = arith.mulf %175, %172 : vector<1x256xf32>
    %177 = arith.addf %171, %176 : vector<1x256xf32>
    %c1_113 = arith.constant 1 : index
    %c9_114 = arith.constant 9 : index
    %178 = memref.load %arg3[%c1_113, %c9_114] : memref<2x49xf32, #tpu.memory_space<smem>>
    %179 = vector.broadcast %178 : f32 to vector<1x256xf32>
    %180 = arith.mulf %179, %173 : vector<1x256xf32>
    %181 = arith.addf %177, %180 : vector<1x256xf32>
    %c0_115 = arith.constant 0 : index
    %c111 = arith.constant 111 : index
    %182 = vector.load %arg6[%c0_115, %c111] : memref<2x512xf32, #tpu.memory_space<vmem>>, vector<1x256xf32>
    %c1_116 = arith.constant 1 : index
    %c111_117 = arith.constant 111 : index
    %183 = vector.load %arg6[%c1_116, %c111_117] : memref<2x512xf32, #tpu.memory_space<vmem>>, vector<1x256xf32>
    %c0_118 = arith.constant 0 : index
    %c16 = arith.constant 16 : index
    %184 = memref.load %arg3[%c0_118, %c16] : memref<2x49xf32, #tpu.memory_space<smem>>
    %185 = vector.broadcast %184 : f32 to vector<1x256xf32>
    %186 = arith.mulf %185, %182 : vector<1x256xf32>
    %187 = arith.addf %181, %186 : vector<1x256xf32>
    %c1_119 = arith.constant 1 : index
    %c16_120 = arith.constant 16 : index
    %188 = memref.load %arg3[%c1_119, %c16_120] : memref<2x49xf32, #tpu.memory_space<smem>>
    %189 = vector.broadcast %188 : f32 to vector<1x256xf32>
    %190 = arith.mulf %189, %183 : vector<1x256xf32>
    %191 = arith.addf %187, %190 : vector<1x256xf32>
    %c0_121 = arith.constant 0 : index
    %c127 = arith.constant 127 : index
    %192 = vector.load %arg6[%c0_121, %c127] : memref<2x512xf32, #tpu.memory_space<vmem>>, vector<1x256xf32>
    %c1_122 = arith.constant 1 : index
    %c127_123 = arith.constant 127 : index
    %193 = vector.load %arg6[%c1_122, %c127_123] : memref<2x512xf32, #tpu.memory_space<vmem>>, vector<1x256xf32>
    %c0_124 = arith.constant 0 : index
    %c23 = arith.constant 23 : index
    %194 = memref.load %arg3[%c0_124, %c23] : memref<2x49xf32, #tpu.memory_space<smem>>
    %195 = vector.broadcast %194 : f32 to vector<1x256xf32>
    %196 = arith.mulf %195, %192 : vector<1x256xf32>
    %197 = arith.addf %191, %196 : vector<1x256xf32>
    %c1_125 = arith.constant 1 : index
    %c23_126 = arith.constant 23 : index
    %198 = memref.load %arg3[%c1_125, %c23_126] : memref<2x49xf32, #tpu.memory_space<smem>>
    %199 = vector.broadcast %198 : f32 to vector<1x256xf32>
    %200 = arith.mulf %199, %193 : vector<1x256xf32>
    %201 = arith.addf %197, %200 : vector<1x256xf32>
    %c0_127 = arith.constant 0 : index
    %c143 = arith.constant 143 : index
    %202 = vector.load %arg6[%c0_127, %c143] : memref<2x512xf32, #tpu.memory_space<vmem>>, vector<1x256xf32>
    %c1_128 = arith.constant 1 : index
    %c143_129 = arith.constant 143 : index
    %203 = vector.load %arg6[%c1_128, %c143_129] : memref<2x512xf32, #tpu.memory_space<vmem>>, vector<1x256xf32>
    %c0_130 = arith.constant 0 : index
    %c30 = arith.constant 30 : index
    %204 = memref.load %arg3[%c0_130, %c30] : memref<2x49xf32, #tpu.memory_space<smem>>
    %205 = vector.broadcast %204 : f32 to vector<1x256xf32>
    %206 = arith.mulf %205, %202 : vector<1x256xf32>
    %207 = arith.addf %201, %206 : vector<1x256xf32>
    %c1_131 = arith.constant 1 : index
    %c30_132 = arith.constant 30 : index
    %208 = memref.load %arg3[%c1_131, %c30_132] : memref<2x49xf32, #tpu.memory_space<smem>>
    %209 = vector.broadcast %208 : f32 to vector<1x256xf32>
    %210 = arith.mulf %209, %203 : vector<1x256xf32>
    %211 = arith.addf %207, %210 : vector<1x256xf32>
    %c0_133 = arith.constant 0 : index
    %c159 = arith.constant 159 : index
    %212 = vector.load %arg6[%c0_133, %c159] : memref<2x512xf32, #tpu.memory_space<vmem>>, vector<1x256xf32>
    %c1_134 = arith.constant 1 : index
    %c159_135 = arith.constant 159 : index
    %213 = vector.load %arg6[%c1_134, %c159_135] : memref<2x512xf32, #tpu.memory_space<vmem>>, vector<1x256xf32>
    %c0_136 = arith.constant 0 : index
    %c37 = arith.constant 37 : index
    %214 = memref.load %arg3[%c0_136, %c37] : memref<2x49xf32, #tpu.memory_space<smem>>
    %215 = vector.broadcast %214 : f32 to vector<1x256xf32>
    %216 = arith.mulf %215, %212 : vector<1x256xf32>
    %217 = arith.addf %211, %216 : vector<1x256xf32>
    %c1_137 = arith.constant 1 : index
    %c37_138 = arith.constant 37 : index
    %218 = memref.load %arg3[%c1_137, %c37_138] : memref<2x49xf32, #tpu.memory_space<smem>>
    %219 = vector.broadcast %218 : f32 to vector<1x256xf32>
    %220 = arith.mulf %219, %213 : vector<1x256xf32>
    %221 = arith.addf %217, %220 : vector<1x256xf32>
    %c0_139 = arith.constant 0 : index
    %c175 = arith.constant 175 : index
    %222 = vector.load %arg6[%c0_139, %c175] : memref<2x512xf32, #tpu.memory_space<vmem>>, vector<1x256xf32>
    %c1_140 = arith.constant 1 : index
    %c175_141 = arith.constant 175 : index
    %223 = vector.load %arg6[%c1_140, %c175_141] : memref<2x512xf32, #tpu.memory_space<vmem>>, vector<1x256xf32>
    %c0_142 = arith.constant 0 : index
    %c44 = arith.constant 44 : index
    %224 = memref.load %arg3[%c0_142, %c44] : memref<2x49xf32, #tpu.memory_space<smem>>
    %225 = vector.broadcast %224 : f32 to vector<1x256xf32>
    %226 = arith.mulf %225, %222 : vector<1x256xf32>
    %227 = arith.addf %221, %226 : vector<1x256xf32>
    %c1_143 = arith.constant 1 : index
    %c44_144 = arith.constant 44 : index
    %228 = memref.load %arg3[%c1_143, %c44_144] : memref<2x49xf32, #tpu.memory_space<smem>>
    %229 = vector.broadcast %228 : f32 to vector<1x256xf32>
    %230 = arith.mulf %229, %223 : vector<1x256xf32>
    %231 = arith.addf %227, %230 : vector<1x256xf32>
    %c2_145 = arith.constant 2 : index
    %c0_146 = arith.constant 0 : index
    %232 = vector.load %arg2[%c2_145, %c0_146] : memref<7x256xf32, #tpu.memory_space<vmem>>, vector<1x256xf32>
    %233 = arith.mulf %232, %231 : vector<1x256xf32>
    %234 = arith.addf %160, %233 : vector<1x256xf32>
    %cst_147 = arith.constant 0.000000e+00 : f32
    %235 = vector.broadcast %cst_147 : f32 to vector<1x256xf32>
    %c0_148 = arith.constant 0 : index
    %c80 = arith.constant 80 : index
    %236 = vector.load %arg6[%c0_148, %c80] : memref<2x512xf32, #tpu.memory_space<vmem>>, vector<1x256xf32>
    %c1_149 = arith.constant 1 : index
    %c80_150 = arith.constant 80 : index
    %237 = vector.load %arg6[%c1_149, %c80_150] : memref<2x512xf32, #tpu.memory_space<vmem>>, vector<1x256xf32>
    %c0_151 = arith.constant 0 : index
    %c3 = arith.constant 3 : index
    %238 = memref.load %arg3[%c0_151, %c3] : memref<2x49xf32, #tpu.memory_space<smem>>
    %239 = vector.broadcast %238 : f32 to vector<1x256xf32>
    %240 = arith.mulf %239, %236 : vector<1x256xf32>
    %241 = arith.addf %235, %240 : vector<1x256xf32>
    %c1_152 = arith.constant 1 : index
    %c3_153 = arith.constant 3 : index
    %242 = memref.load %arg3[%c1_152, %c3_153] : memref<2x49xf32, #tpu.memory_space<smem>>
    %243 = vector.broadcast %242 : f32 to vector<1x256xf32>
    %244 = arith.mulf %243, %237 : vector<1x256xf32>
    %245 = arith.addf %241, %244 : vector<1x256xf32>
    %c0_154 = arith.constant 0 : index
    %c96 = arith.constant 96 : index
    %246 = vector.load %arg6[%c0_154, %c96] : memref<2x512xf32, #tpu.memory_space<vmem>>, vector<1x256xf32>
    %c1_155 = arith.constant 1 : index
    %c96_156 = arith.constant 96 : index
    %247 = vector.load %arg6[%c1_155, %c96_156] : memref<2x512xf32, #tpu.memory_space<vmem>>, vector<1x256xf32>
    %c0_157 = arith.constant 0 : index
    %c10 = arith.constant 10 : index
    %248 = memref.load %arg3[%c0_157, %c10] : memref<2x49xf32, #tpu.memory_space<smem>>
    %249 = vector.broadcast %248 : f32 to vector<1x256xf32>
    %250 = arith.mulf %249, %246 : vector<1x256xf32>
    %251 = arith.addf %245, %250 : vector<1x256xf32>
    %c1_158 = arith.constant 1 : index
    %c10_159 = arith.constant 10 : index
    %252 = memref.load %arg3[%c1_158, %c10_159] : memref<2x49xf32, #tpu.memory_space<smem>>
    %253 = vector.broadcast %252 : f32 to vector<1x256xf32>
    %254 = arith.mulf %253, %247 : vector<1x256xf32>
    %255 = arith.addf %251, %254 : vector<1x256xf32>
    %c0_160 = arith.constant 0 : index
    %c112 = arith.constant 112 : index
    %256 = vector.load %arg6[%c0_160, %c112] : memref<2x512xf32, #tpu.memory_space<vmem>>, vector<1x256xf32>
    %c1_161 = arith.constant 1 : index
    %c112_162 = arith.constant 112 : index
    %257 = vector.load %arg6[%c1_161, %c112_162] : memref<2x512xf32, #tpu.memory_space<vmem>>, vector<1x256xf32>
    %c0_163 = arith.constant 0 : index
    %c17 = arith.constant 17 : index
    %258 = memref.load %arg3[%c0_163, %c17] : memref<2x49xf32, #tpu.memory_space<smem>>
    %259 = vector.broadcast %258 : f32 to vector<1x256xf32>
    %260 = arith.mulf %259, %256 : vector<1x256xf32>
    %261 = arith.addf %255, %260 : vector<1x256xf32>
    %c1_164 = arith.constant 1 : index
    %c17_165 = arith.constant 17 : index
    %262 = memref.load %arg3[%c1_164, %c17_165] : memref<2x49xf32, #tpu.memory_space<smem>>
    %263 = vector.broadcast %262 : f32 to vector<1x256xf32>
    %264 = arith.mulf %263, %257 : vector<1x256xf32>
    %265 = arith.addf %261, %264 : vector<1x256xf32>
    %c0_166 = arith.constant 0 : index
    %c128_167 = arith.constant 128 : index
    %266 = vector.load %arg6[%c0_166, %c128_167] : memref<2x512xf32, #tpu.memory_space<vmem>>, vector<1x256xf32>
    %c1_168 = arith.constant 1 : index
    %c128_169 = arith.constant 128 : index
    %267 = vector.load %arg6[%c1_168, %c128_169] : memref<2x512xf32, #tpu.memory_space<vmem>>, vector<1x256xf32>
    %c0_170 = arith.constant 0 : index
    %c24 = arith.constant 24 : index
    %268 = memref.load %arg3[%c0_170, %c24] : memref<2x49xf32, #tpu.memory_space<smem>>
    %269 = vector.broadcast %268 : f32 to vector<1x256xf32>
    %270 = arith.mulf %269, %266 : vector<1x256xf32>
    %271 = arith.addf %265, %270 : vector<1x256xf32>
    %c1_171 = arith.constant 1 : index
    %c24_172 = arith.constant 24 : index
    %272 = memref.load %arg3[%c1_171, %c24_172] : memref<2x49xf32, #tpu.memory_space<smem>>
    %273 = vector.broadcast %272 : f32 to vector<1x256xf32>
    %274 = arith.mulf %273, %267 : vector<1x256xf32>
    %275 = arith.addf %271, %274 : vector<1x256xf32>
    %c0_173 = arith.constant 0 : index
    %c144 = arith.constant 144 : index
    %276 = vector.load %arg6[%c0_173, %c144] : memref<2x512xf32, #tpu.memory_space<vmem>>, vector<1x256xf32>
    %c1_174 = arith.constant 1 : index
    %c144_175 = arith.constant 144 : index
    %277 = vector.load %arg6[%c1_174, %c144_175] : memref<2x512xf32, #tpu.memory_space<vmem>>, vector<1x256xf32>
    %c0_176 = arith.constant 0 : index
    %c31 = arith.constant 31 : index
    %278 = memref.load %arg3[%c0_176, %c31] : memref<2x49xf32, #tpu.memory_space<smem>>
    %279 = vector.broadcast %278 : f32 to vector<1x256xf32>
    %280 = arith.mulf %279, %276 : vector<1x256xf32>
    %281 = arith.addf %275, %280 : vector<1x256xf32>
    %c1_177 = arith.constant 1 : index
    %c31_178 = arith.constant 31 : index
    %282 = memref.load %arg3[%c1_177, %c31_178] : memref<2x49xf32, #tpu.memory_space<smem>>
    %283 = vector.broadcast %282 : f32 to vector<1x256xf32>
    %284 = arith.mulf %283, %277 : vector<1x256xf32>
    %285 = arith.addf %281, %284 : vector<1x256xf32>
    %c0_179 = arith.constant 0 : index
    %c160 = arith.constant 160 : index
    %286 = vector.load %arg6[%c0_179, %c160] : memref<2x512xf32, #tpu.memory_space<vmem>>, vector<1x256xf32>
    %c1_180 = arith.constant 1 : index
    %c160_181 = arith.constant 160 : index
    %287 = vector.load %arg6[%c1_180, %c160_181] : memref<2x512xf32, #tpu.memory_space<vmem>>, vector<1x256xf32>
    %c0_182 = arith.constant 0 : index
    %c38 = arith.constant 38 : index
    %288 = memref.load %arg3[%c0_182, %c38] : memref<2x49xf32, #tpu.memory_space<smem>>
    %289 = vector.broadcast %288 : f32 to vector<1x256xf32>
    %290 = arith.mulf %289, %286 : vector<1x256xf32>
    %291 = arith.addf %285, %290 : vector<1x256xf32>
    %c1_183 = arith.constant 1 : index
    %c38_184 = arith.constant 38 : index
    %292 = memref.load %arg3[%c1_183, %c38_184] : memref<2x49xf32, #tpu.memory_space<smem>>
    %293 = vector.broadcast %292 : f32 to vector<1x256xf32>
    %294 = arith.mulf %293, %287 : vector<1x256xf32>
    %295 = arith.addf %291, %294 : vector<1x256xf32>
    %c0_185 = arith.constant 0 : index
    %c176 = arith.constant 176 : index
    %296 = vector.load %arg6[%c0_185, %c176] : memref<2x512xf32, #tpu.memory_space<vmem>>, vector<1x256xf32>
    %c1_186 = arith.constant 1 : index
    %c176_187 = arith.constant 176 : index
    %297 = vector.load %arg6[%c1_186, %c176_187] : memref<2x512xf32, #tpu.memory_space<vmem>>, vector<1x256xf32>
    %c0_188 = arith.constant 0 : index
    %c45 = arith.constant 45 : index
    %298 = memref.load %arg3[%c0_188, %c45] : memref<2x49xf32, #tpu.memory_space<smem>>
    %299 = vector.broadcast %298 : f32 to vector<1x256xf32>
    %300 = arith.mulf %299, %296 : vector<1x256xf32>
    %301 = arith.addf %295, %300 : vector<1x256xf32>
    %c1_189 = arith.constant 1 : index
    %c45_190 = arith.constant 45 : index
    %302 = memref.load %arg3[%c1_189, %c45_190] : memref<2x49xf32, #tpu.memory_space<smem>>
    %303 = vector.broadcast %302 : f32 to vector<1x256xf32>
    %304 = arith.mulf %303, %297 : vector<1x256xf32>
    %305 = arith.addf %301, %304 : vector<1x256xf32>
    %c3_191 = arith.constant 3 : index
    %c0_192 = arith.constant 0 : index
    %306 = vector.load %arg2[%c3_191, %c0_192] : memref<7x256xf32, #tpu.memory_space<vmem>>, vector<1x256xf32>
    %307 = arith.mulf %306, %305 : vector<1x256xf32>
    %308 = arith.addf %234, %307 : vector<1x256xf32>
    %cst_193 = arith.constant 0.000000e+00 : f32
    %309 = vector.broadcast %cst_193 : f32 to vector<1x256xf32>
    %c0_194 = arith.constant 0 : index
    %c81 = arith.constant 81 : index
    %310 = vector.load %arg6[%c0_194, %c81] : memref<2x512xf32, #tpu.memory_space<vmem>>, vector<1x256xf32>
    %c1_195 = arith.constant 1 : index
    %c81_196 = arith.constant 81 : index
    %311 = vector.load %arg6[%c1_195, %c81_196] : memref<2x512xf32, #tpu.memory_space<vmem>>, vector<1x256xf32>
    %c0_197 = arith.constant 0 : index
    %c4 = arith.constant 4 : index
    %312 = memref.load %arg3[%c0_197, %c4] : memref<2x49xf32, #tpu.memory_space<smem>>
    %313 = vector.broadcast %312 : f32 to vector<1x256xf32>
    %314 = arith.mulf %313, %310 : vector<1x256xf32>
    %315 = arith.addf %309, %314 : vector<1x256xf32>
    %c1_198 = arith.constant 1 : index
    %c4_199 = arith.constant 4 : index
    %316 = memref.load %arg3[%c1_198, %c4_199] : memref<2x49xf32, #tpu.memory_space<smem>>
    %317 = vector.broadcast %316 : f32 to vector<1x256xf32>
    %318 = arith.mulf %317, %311 : vector<1x256xf32>
    %319 = arith.addf %315, %318 : vector<1x256xf32>
    %c0_200 = arith.constant 0 : index
    %c97 = arith.constant 97 : index
    %320 = vector.load %arg6[%c0_200, %c97] : memref<2x512xf32, #tpu.memory_space<vmem>>, vector<1x256xf32>
    %c1_201 = arith.constant 1 : index
    %c97_202 = arith.constant 97 : index
    %321 = vector.load %arg6[%c1_201, %c97_202] : memref<2x512xf32, #tpu.memory_space<vmem>>, vector<1x256xf32>
    %c0_203 = arith.constant 0 : index
    %c11 = arith.constant 11 : index
    %322 = memref.load %arg3[%c0_203, %c11] : memref<2x49xf32, #tpu.memory_space<smem>>
    %323 = vector.broadcast %322 : f32 to vector<1x256xf32>
    %324 = arith.mulf %323, %320 : vector<1x256xf32>
    %325 = arith.addf %319, %324 : vector<1x256xf32>
    %c1_204 = arith.constant 1 : index
    %c11_205 = arith.constant 11 : index
    %326 = memref.load %arg3[%c1_204, %c11_205] : memref<2x49xf32, #tpu.memory_space<smem>>
    %327 = vector.broadcast %326 : f32 to vector<1x256xf32>
    %328 = arith.mulf %327, %321 : vector<1x256xf32>
    %329 = arith.addf %325, %328 : vector<1x256xf32>
    %c0_206 = arith.constant 0 : index
    %c113 = arith.constant 113 : index
    %330 = vector.load %arg6[%c0_206, %c113] : memref<2x512xf32, #tpu.memory_space<vmem>>, vector<1x256xf32>
    %c1_207 = arith.constant 1 : index
    %c113_208 = arith.constant 113 : index
    %331 = vector.load %arg6[%c1_207, %c113_208] : memref<2x512xf32, #tpu.memory_space<vmem>>, vector<1x256xf32>
    %c0_209 = arith.constant 0 : index
    %c18 = arith.constant 18 : index
    %332 = memref.load %arg3[%c0_209, %c18] : memref<2x49xf32, #tpu.memory_space<smem>>
    %333 = vector.broadcast %332 : f32 to vector<1x256xf32>
    %334 = arith.mulf %333, %330 : vector<1x256xf32>
    %335 = arith.addf %329, %334 : vector<1x256xf32>
    %c1_210 = arith.constant 1 : index
    %c18_211 = arith.constant 18 : index
    %336 = memref.load %arg3[%c1_210, %c18_211] : memref<2x49xf32, #tpu.memory_space<smem>>
    %337 = vector.broadcast %336 : f32 to vector<1x256xf32>
    %338 = arith.mulf %337, %331 : vector<1x256xf32>
    %339 = arith.addf %335, %338 : vector<1x256xf32>
    %c0_212 = arith.constant 0 : index
    %c129 = arith.constant 129 : index
    %340 = vector.load %arg6[%c0_212, %c129] : memref<2x512xf32, #tpu.memory_space<vmem>>, vector<1x256xf32>
    %c1_213 = arith.constant 1 : index
    %c129_214 = arith.constant 129 : index
    %341 = vector.load %arg6[%c1_213, %c129_214] : memref<2x512xf32, #tpu.memory_space<vmem>>, vector<1x256xf32>
    %c0_215 = arith.constant 0 : index
    %c25 = arith.constant 25 : index
    %342 = memref.load %arg3[%c0_215, %c25] : memref<2x49xf32, #tpu.memory_space<smem>>
    %343 = vector.broadcast %342 : f32 to vector<1x256xf32>
    %344 = arith.mulf %343, %340 : vector<1x256xf32>
    %345 = arith.addf %339, %344 : vector<1x256xf32>
    %c1_216 = arith.constant 1 : index
    %c25_217 = arith.constant 25 : index
    %346 = memref.load %arg3[%c1_216, %c25_217] : memref<2x49xf32, #tpu.memory_space<smem>>
    %347 = vector.broadcast %346 : f32 to vector<1x256xf32>
    %348 = arith.mulf %347, %341 : vector<1x256xf32>
    %349 = arith.addf %345, %348 : vector<1x256xf32>
    %c0_218 = arith.constant 0 : index
    %c145 = arith.constant 145 : index
    %350 = vector.load %arg6[%c0_218, %c145] : memref<2x512xf32, #tpu.memory_space<vmem>>, vector<1x256xf32>
    %c1_219 = arith.constant 1 : index
    %c145_220 = arith.constant 145 : index
    %351 = vector.load %arg6[%c1_219, %c145_220] : memref<2x512xf32, #tpu.memory_space<vmem>>, vector<1x256xf32>
    %c0_221 = arith.constant 0 : index
    %c32 = arith.constant 32 : index
    %352 = memref.load %arg3[%c0_221, %c32] : memref<2x49xf32, #tpu.memory_space<smem>>
    %353 = vector.broadcast %352 : f32 to vector<1x256xf32>
    %354 = arith.mulf %353, %350 : vector<1x256xf32>
    %355 = arith.addf %349, %354 : vector<1x256xf32>
    %c1_222 = arith.constant 1 : index
    %c32_223 = arith.constant 32 : index
    %356 = memref.load %arg3[%c1_222, %c32_223] : memref<2x49xf32, #tpu.memory_space<smem>>
    %357 = vector.broadcast %356 : f32 to vector<1x256xf32>
    %358 = arith.mulf %357, %351 : vector<1x256xf32>
    %359 = arith.addf %355, %358 : vector<1x256xf32>
    %c0_224 = arith.constant 0 : index
    %c161 = arith.constant 161 : index
    %360 = vector.load %arg6[%c0_224, %c161] : memref<2x512xf32, #tpu.memory_space<vmem>>, vector<1x256xf32>
    %c1_225 = arith.constant 1 : index
    %c161_226 = arith.constant 161 : index
    %361 = vector.load %arg6[%c1_225, %c161_226] : memref<2x512xf32, #tpu.memory_space<vmem>>, vector<1x256xf32>
    %c0_227 = arith.constant 0 : index
    %c39 = arith.constant 39 : index
    %362 = memref.load %arg3[%c0_227, %c39] : memref<2x49xf32, #tpu.memory_space<smem>>
    %363 = vector.broadcast %362 : f32 to vector<1x256xf32>
    %364 = arith.mulf %363, %360 : vector<1x256xf32>
    %365 = arith.addf %359, %364 : vector<1x256xf32>
    %c1_228 = arith.constant 1 : index
    %c39_229 = arith.constant 39 : index
    %366 = memref.load %arg3[%c1_228, %c39_229] : memref<2x49xf32, #tpu.memory_space<smem>>
    %367 = vector.broadcast %366 : f32 to vector<1x256xf32>
    %368 = arith.mulf %367, %361 : vector<1x256xf32>
    %369 = arith.addf %365, %368 : vector<1x256xf32>
    %c0_230 = arith.constant 0 : index
    %c177 = arith.constant 177 : index
    %370 = vector.load %arg6[%c0_230, %c177] : memref<2x512xf32, #tpu.memory_space<vmem>>, vector<1x256xf32>
    %c1_231 = arith.constant 1 : index
    %c177_232 = arith.constant 177 : index
    %371 = vector.load %arg6[%c1_231, %c177_232] : memref<2x512xf32, #tpu.memory_space<vmem>>, vector<1x256xf32>
    %c0_233 = arith.constant 0 : index
    %c46 = arith.constant 46 : index
    %372 = memref.load %arg3[%c0_233, %c46] : memref<2x49xf32, #tpu.memory_space<smem>>
    %373 = vector.broadcast %372 : f32 to vector<1x256xf32>
    %374 = arith.mulf %373, %370 : vector<1x256xf32>
    %375 = arith.addf %369, %374 : vector<1x256xf32>
    %c1_234 = arith.constant 1 : index
    %c46_235 = arith.constant 46 : index
    %376 = memref.load %arg3[%c1_234, %c46_235] : memref<2x49xf32, #tpu.memory_space<smem>>
    %377 = vector.broadcast %376 : f32 to vector<1x256xf32>
    %378 = arith.mulf %377, %371 : vector<1x256xf32>
    %379 = arith.addf %375, %378 : vector<1x256xf32>
    %c4_236 = arith.constant 4 : index
    %c0_237 = arith.constant 0 : index
    %380 = vector.load %arg2[%c4_236, %c0_237] : memref<7x256xf32, #tpu.memory_space<vmem>>, vector<1x256xf32>
    %381 = arith.mulf %380, %379 : vector<1x256xf32>
    %382 = arith.addf %308, %381 : vector<1x256xf32>
    %cst_238 = arith.constant 0.000000e+00 : f32
    %383 = vector.broadcast %cst_238 : f32 to vector<1x256xf32>
    %c0_239 = arith.constant 0 : index
    %c82 = arith.constant 82 : index
    %384 = vector.load %arg6[%c0_239, %c82] : memref<2x512xf32, #tpu.memory_space<vmem>>, vector<1x256xf32>
    %c1_240 = arith.constant 1 : index
    %c82_241 = arith.constant 82 : index
    %385 = vector.load %arg6[%c1_240, %c82_241] : memref<2x512xf32, #tpu.memory_space<vmem>>, vector<1x256xf32>
    %c0_242 = arith.constant 0 : index
    %c5 = arith.constant 5 : index
    %386 = memref.load %arg3[%c0_242, %c5] : memref<2x49xf32, #tpu.memory_space<smem>>
    %387 = vector.broadcast %386 : f32 to vector<1x256xf32>
    %388 = arith.mulf %387, %384 : vector<1x256xf32>
    %389 = arith.addf %383, %388 : vector<1x256xf32>
    %c1_243 = arith.constant 1 : index
    %c5_244 = arith.constant 5 : index
    %390 = memref.load %arg3[%c1_243, %c5_244] : memref<2x49xf32, #tpu.memory_space<smem>>
    %391 = vector.broadcast %390 : f32 to vector<1x256xf32>
    %392 = arith.mulf %391, %385 : vector<1x256xf32>
    %393 = arith.addf %389, %392 : vector<1x256xf32>
    %c0_245 = arith.constant 0 : index
    %c98 = arith.constant 98 : index
    %394 = vector.load %arg6[%c0_245, %c98] : memref<2x512xf32, #tpu.memory_space<vmem>>, vector<1x256xf32>
    %c1_246 = arith.constant 1 : index
    %c98_247 = arith.constant 98 : index
    %395 = vector.load %arg6[%c1_246, %c98_247] : memref<2x512xf32, #tpu.memory_space<vmem>>, vector<1x256xf32>
    %c0_248 = arith.constant 0 : index
    %c12 = arith.constant 12 : index
    %396 = memref.load %arg3[%c0_248, %c12] : memref<2x49xf32, #tpu.memory_space<smem>>
    %397 = vector.broadcast %396 : f32 to vector<1x256xf32>
    %398 = arith.mulf %397, %394 : vector<1x256xf32>
    %399 = arith.addf %393, %398 : vector<1x256xf32>
    %c1_249 = arith.constant 1 : index
    %c12_250 = arith.constant 12 : index
    %400 = memref.load %arg3[%c1_249, %c12_250] : memref<2x49xf32, #tpu.memory_space<smem>>
    %401 = vector.broadcast %400 : f32 to vector<1x256xf32>
    %402 = arith.mulf %401, %395 : vector<1x256xf32>
    %403 = arith.addf %399, %402 : vector<1x256xf32>
    %c0_251 = arith.constant 0 : index
    %c114 = arith.constant 114 : index
    %404 = vector.load %arg6[%c0_251, %c114] : memref<2x512xf32, #tpu.memory_space<vmem>>, vector<1x256xf32>
    %c1_252 = arith.constant 1 : index
    %c114_253 = arith.constant 114 : index
    %405 = vector.load %arg6[%c1_252, %c114_253] : memref<2x512xf32, #tpu.memory_space<vmem>>, vector<1x256xf32>
    %c0_254 = arith.constant 0 : index
    %c19 = arith.constant 19 : index
    %406 = memref.load %arg3[%c0_254, %c19] : memref<2x49xf32, #tpu.memory_space<smem>>
    %407 = vector.broadcast %406 : f32 to vector<1x256xf32>
    %408 = arith.mulf %407, %404 : vector<1x256xf32>
    %409 = arith.addf %403, %408 : vector<1x256xf32>
    %c1_255 = arith.constant 1 : index
    %c19_256 = arith.constant 19 : index
    %410 = memref.load %arg3[%c1_255, %c19_256] : memref<2x49xf32, #tpu.memory_space<smem>>
    %411 = vector.broadcast %410 : f32 to vector<1x256xf32>
    %412 = arith.mulf %411, %405 : vector<1x256xf32>
    %413 = arith.addf %409, %412 : vector<1x256xf32>
    %c0_257 = arith.constant 0 : index
    %c130 = arith.constant 130 : index
    %414 = vector.load %arg6[%c0_257, %c130] : memref<2x512xf32, #tpu.memory_space<vmem>>, vector<1x256xf32>
    %c1_258 = arith.constant 1 : index
    %c130_259 = arith.constant 130 : index
    %415 = vector.load %arg6[%c1_258, %c130_259] : memref<2x512xf32, #tpu.memory_space<vmem>>, vector<1x256xf32>
    %c0_260 = arith.constant 0 : index
    %c26 = arith.constant 26 : index
    %416 = memref.load %arg3[%c0_260, %c26] : memref<2x49xf32, #tpu.memory_space<smem>>
    %417 = vector.broadcast %416 : f32 to vector<1x256xf32>
    %418 = arith.mulf %417, %414 : vector<1x256xf32>
    %419 = arith.addf %413, %418 : vector<1x256xf32>
    %c1_261 = arith.constant 1 : index
    %c26_262 = arith.constant 26 : index
    %420 = memref.load %arg3[%c1_261, %c26_262] : memref<2x49xf32, #tpu.memory_space<smem>>
    %421 = vector.broadcast %420 : f32 to vector<1x256xf32>
    %422 = arith.mulf %421, %415 : vector<1x256xf32>
    %423 = arith.addf %419, %422 : vector<1x256xf32>
    %c0_263 = arith.constant 0 : index
    %c146 = arith.constant 146 : index
    %424 = vector.load %arg6[%c0_263, %c146] : memref<2x512xf32, #tpu.memory_space<vmem>>, vector<1x256xf32>
    %c1_264 = arith.constant 1 : index
    %c146_265 = arith.constant 146 : index
    %425 = vector.load %arg6[%c1_264, %c146_265] : memref<2x512xf32, #tpu.memory_space<vmem>>, vector<1x256xf32>
    %c0_266 = arith.constant 0 : index
    %c33 = arith.constant 33 : index
    %426 = memref.load %arg3[%c0_266, %c33] : memref<2x49xf32, #tpu.memory_space<smem>>
    %427 = vector.broadcast %426 : f32 to vector<1x256xf32>
    %428 = arith.mulf %427, %424 : vector<1x256xf32>
    %429 = arith.addf %423, %428 : vector<1x256xf32>
    %c1_267 = arith.constant 1 : index
    %c33_268 = arith.constant 33 : index
    %430 = memref.load %arg3[%c1_267, %c33_268] : memref<2x49xf32, #tpu.memory_space<smem>>
    %431 = vector.broadcast %430 : f32 to vector<1x256xf32>
    %432 = arith.mulf %431, %425 : vector<1x256xf32>
    %433 = arith.addf %429, %432 : vector<1x256xf32>
    %c0_269 = arith.constant 0 : index
    %c162 = arith.constant 162 : index
    %434 = vector.load %arg6[%c0_269, %c162] : memref<2x512xf32, #tpu.memory_space<vmem>>, vector<1x256xf32>
    %c1_270 = arith.constant 1 : index
    %c162_271 = arith.constant 162 : index
    %435 = vector.load %arg6[%c1_270, %c162_271] : memref<2x512xf32, #tpu.memory_space<vmem>>, vector<1x256xf32>
    %c0_272 = arith.constant 0 : index
    %c40 = arith.constant 40 : index
    %436 = memref.load %arg3[%c0_272, %c40] : memref<2x49xf32, #tpu.memory_space<smem>>
    %437 = vector.broadcast %436 : f32 to vector<1x256xf32>
    %438 = arith.mulf %437, %434 : vector<1x256xf32>
    %439 = arith.addf %433, %438 : vector<1x256xf32>
    %c1_273 = arith.constant 1 : index
    %c40_274 = arith.constant 40 : index
    %440 = memref.load %arg3[%c1_273, %c40_274] : memref<2x49xf32, #tpu.memory_space<smem>>
    %441 = vector.broadcast %440 : f32 to vector<1x256xf32>
    %442 = arith.mulf %441, %435 : vector<1x256xf32>
    %443 = arith.addf %439, %442 : vector<1x256xf32>
    %c0_275 = arith.constant 0 : index
    %c178 = arith.constant 178 : index
    %444 = vector.load %arg6[%c0_275, %c178] : memref<2x512xf32, #tpu.memory_space<vmem>>, vector<1x256xf32>
    %c1_276 = arith.constant 1 : index
    %c178_277 = arith.constant 178 : index
    %445 = vector.load %arg6[%c1_276, %c178_277] : memref<2x512xf32, #tpu.memory_space<vmem>>, vector<1x256xf32>
    %c0_278 = arith.constant 0 : index
    %c47 = arith.constant 47 : index
    %446 = memref.load %arg3[%c0_278, %c47] : memref<2x49xf32, #tpu.memory_space<smem>>
    %447 = vector.broadcast %446 : f32 to vector<1x256xf32>
    %448 = arith.mulf %447, %444 : vector<1x256xf32>
    %449 = arith.addf %443, %448 : vector<1x256xf32>
    %c1_279 = arith.constant 1 : index
    %c47_280 = arith.constant 47 : index
    %450 = memref.load %arg3[%c1_279, %c47_280] : memref<2x49xf32, #tpu.memory_space<smem>>
    %451 = vector.broadcast %450 : f32 to vector<1x256xf32>
    %452 = arith.mulf %451, %445 : vector<1x256xf32>
    %453 = arith.addf %449, %452 : vector<1x256xf32>
    %c5_281 = arith.constant 5 : index
    %c0_282 = arith.constant 0 : index
    %454 = vector.load %arg2[%c5_281, %c0_282] : memref<7x256xf32, #tpu.memory_space<vmem>>, vector<1x256xf32>
    %455 = arith.mulf %454, %453 : vector<1x256xf32>
    %456 = arith.addf %382, %455 : vector<1x256xf32>
    %cst_283 = arith.constant 0.000000e+00 : f32
    %457 = vector.broadcast %cst_283 : f32 to vector<1x256xf32>
    %c0_284 = arith.constant 0 : index
    %c83 = arith.constant 83 : index
    %458 = vector.load %arg6[%c0_284, %c83] : memref<2x512xf32, #tpu.memory_space<vmem>>, vector<1x256xf32>
    %c1_285 = arith.constant 1 : index
    %c83_286 = arith.constant 83 : index
    %459 = vector.load %arg6[%c1_285, %c83_286] : memref<2x512xf32, #tpu.memory_space<vmem>>, vector<1x256xf32>
    %c0_287 = arith.constant 0 : index
    %c6 = arith.constant 6 : index
    %460 = memref.load %arg3[%c0_287, %c6] : memref<2x49xf32, #tpu.memory_space<smem>>
    %461 = vector.broadcast %460 : f32 to vector<1x256xf32>
    %462 = arith.mulf %461, %458 : vector<1x256xf32>
    %463 = arith.addf %457, %462 : vector<1x256xf32>
    %c1_288 = arith.constant 1 : index
    %c6_289 = arith.constant 6 : index
    %464 = memref.load %arg3[%c1_288, %c6_289] : memref<2x49xf32, #tpu.memory_space<smem>>
    %465 = vector.broadcast %464 : f32 to vector<1x256xf32>
    %466 = arith.mulf %465, %459 : vector<1x256xf32>
    %467 = arith.addf %463, %466 : vector<1x256xf32>
    %c0_290 = arith.constant 0 : index
    %c99 = arith.constant 99 : index
    %468 = vector.load %arg6[%c0_290, %c99] : memref<2x512xf32, #tpu.memory_space<vmem>>, vector<1x256xf32>
    %c1_291 = arith.constant 1 : index
    %c99_292 = arith.constant 99 : index
    %469 = vector.load %arg6[%c1_291, %c99_292] : memref<2x512xf32, #tpu.memory_space<vmem>>, vector<1x256xf32>
    %c0_293 = arith.constant 0 : index
    %c13 = arith.constant 13 : index
    %470 = memref.load %arg3[%c0_293, %c13] : memref<2x49xf32, #tpu.memory_space<smem>>
    %471 = vector.broadcast %470 : f32 to vector<1x256xf32>
    %472 = arith.mulf %471, %468 : vector<1x256xf32>
    %473 = arith.addf %467, %472 : vector<1x256xf32>
    %c1_294 = arith.constant 1 : index
    %c13_295 = arith.constant 13 : index
    %474 = memref.load %arg3[%c1_294, %c13_295] : memref<2x49xf32, #tpu.memory_space<smem>>
    %475 = vector.broadcast %474 : f32 to vector<1x256xf32>
    %476 = arith.mulf %475, %469 : vector<1x256xf32>
    %477 = arith.addf %473, %476 : vector<1x256xf32>
    %c0_296 = arith.constant 0 : index
    %c115 = arith.constant 115 : index
    %478 = vector.load %arg6[%c0_296, %c115] : memref<2x512xf32, #tpu.memory_space<vmem>>, vector<1x256xf32>
    %c1_297 = arith.constant 1 : index
    %c115_298 = arith.constant 115 : index
    %479 = vector.load %arg6[%c1_297, %c115_298] : memref<2x512xf32, #tpu.memory_space<vmem>>, vector<1x256xf32>
    %c0_299 = arith.constant 0 : index
    %c20 = arith.constant 20 : index
    %480 = memref.load %arg3[%c0_299, %c20] : memref<2x49xf32, #tpu.memory_space<smem>>
    %481 = vector.broadcast %480 : f32 to vector<1x256xf32>
    %482 = arith.mulf %481, %478 : vector<1x256xf32>
    %483 = arith.addf %477, %482 : vector<1x256xf32>
    %c1_300 = arith.constant 1 : index
    %c20_301 = arith.constant 20 : index
    %484 = memref.load %arg3[%c1_300, %c20_301] : memref<2x49xf32, #tpu.memory_space<smem>>
    %485 = vector.broadcast %484 : f32 to vector<1x256xf32>
    %486 = arith.mulf %485, %479 : vector<1x256xf32>
    %487 = arith.addf %483, %486 : vector<1x256xf32>
    %c0_302 = arith.constant 0 : index
    %c131 = arith.constant 131 : index
    %488 = vector.load %arg6[%c0_302, %c131] : memref<2x512xf32, #tpu.memory_space<vmem>>, vector<1x256xf32>
    %c1_303 = arith.constant 1 : index
    %c131_304 = arith.constant 131 : index
    %489 = vector.load %arg6[%c1_303, %c131_304] : memref<2x512xf32, #tpu.memory_space<vmem>>, vector<1x256xf32>
    %c0_305 = arith.constant 0 : index
    %c27 = arith.constant 27 : index
    %490 = memref.load %arg3[%c0_305, %c27] : memref<2x49xf32, #tpu.memory_space<smem>>
    %491 = vector.broadcast %490 : f32 to vector<1x256xf32>
    %492 = arith.mulf %491, %488 : vector<1x256xf32>
    %493 = arith.addf %487, %492 : vector<1x256xf32>
    %c1_306 = arith.constant 1 : index
    %c27_307 = arith.constant 27 : index
    %494 = memref.load %arg3[%c1_306, %c27_307] : memref<2x49xf32, #tpu.memory_space<smem>>
    %495 = vector.broadcast %494 : f32 to vector<1x256xf32>
    %496 = arith.mulf %495, %489 : vector<1x256xf32>
    %497 = arith.addf %493, %496 : vector<1x256xf32>
    %c0_308 = arith.constant 0 : index
    %c147 = arith.constant 147 : index
    %498 = vector.load %arg6[%c0_308, %c147] : memref<2x512xf32, #tpu.memory_space<vmem>>, vector<1x256xf32>
    %c1_309 = arith.constant 1 : index
    %c147_310 = arith.constant 147 : index
    %499 = vector.load %arg6[%c1_309, %c147_310] : memref<2x512xf32, #tpu.memory_space<vmem>>, vector<1x256xf32>
    %c0_311 = arith.constant 0 : index
    %c34 = arith.constant 34 : index
    %500 = memref.load %arg3[%c0_311, %c34] : memref<2x49xf32, #tpu.memory_space<smem>>
    %501 = vector.broadcast %500 : f32 to vector<1x256xf32>
    %502 = arith.mulf %501, %498 : vector<1x256xf32>
    %503 = arith.addf %497, %502 : vector<1x256xf32>
    %c1_312 = arith.constant 1 : index
    %c34_313 = arith.constant 34 : index
    %504 = memref.load %arg3[%c1_312, %c34_313] : memref<2x49xf32, #tpu.memory_space<smem>>
    %505 = vector.broadcast %504 : f32 to vector<1x256xf32>
    %506 = arith.mulf %505, %499 : vector<1x256xf32>
    %507 = arith.addf %503, %506 : vector<1x256xf32>
    %c0_314 = arith.constant 0 : index
    %c163 = arith.constant 163 : index
    %508 = vector.load %arg6[%c0_314, %c163] : memref<2x512xf32, #tpu.memory_space<vmem>>, vector<1x256xf32>
    %c1_315 = arith.constant 1 : index
    %c163_316 = arith.constant 163 : index
    %509 = vector.load %arg6[%c1_315, %c163_316] : memref<2x512xf32, #tpu.memory_space<vmem>>, vector<1x256xf32>
    %c0_317 = arith.constant 0 : index
    %c41 = arith.constant 41 : index
    %510 = memref.load %arg3[%c0_317, %c41] : memref<2x49xf32, #tpu.memory_space<smem>>
    %511 = vector.broadcast %510 : f32 to vector<1x256xf32>
    %512 = arith.mulf %511, %508 : vector<1x256xf32>
    %513 = arith.addf %507, %512 : vector<1x256xf32>
    %c1_318 = arith.constant 1 : index
    %c41_319 = arith.constant 41 : index
    %514 = memref.load %arg3[%c1_318, %c41_319] : memref<2x49xf32, #tpu.memory_space<smem>>
    %515 = vector.broadcast %514 : f32 to vector<1x256xf32>
    %516 = arith.mulf %515, %509 : vector<1x256xf32>
    %517 = arith.addf %513, %516 : vector<1x256xf32>
    %c0_320 = arith.constant 0 : index
    %c179 = arith.constant 179 : index
    %518 = vector.load %arg6[%c0_320, %c179] : memref<2x512xf32, #tpu.memory_space<vmem>>, vector<1x256xf32>
    %c1_321 = arith.constant 1 : index
    %c179_322 = arith.constant 179 : index
    %519 = vector.load %arg6[%c1_321, %c179_322] : memref<2x512xf32, #tpu.memory_space<vmem>>, vector<1x256xf32>
    %c0_323 = arith.constant 0 : index
    %c48 = arith.constant 48 : index
    %520 = memref.load %arg3[%c0_323, %c48] : memref<2x49xf32, #tpu.memory_space<smem>>
    %521 = vector.broadcast %520 : f32 to vector<1x256xf32>
    %522 = arith.mulf %521, %518 : vector<1x256xf32>
    %523 = arith.addf %517, %522 : vector<1x256xf32>
    %c1_324 = arith.constant 1 : index
    %c48_325 = arith.constant 48 : index
    %524 = memref.load %arg3[%c1_324, %c48_325] : memref<2x49xf32, #tpu.memory_space<smem>>
    %525 = vector.broadcast %524 : f32 to vector<1x256xf32>
    %526 = arith.mulf %525, %519 : vector<1x256xf32>
    %527 = arith.addf %523, %526 : vector<1x256xf32>
    %c6_326 = arith.constant 6 : index
    %c0_327 = arith.constant 0 : index
    %528 = vector.load %arg2[%c6_326, %c0_327] : memref<7x256xf32, #tpu.memory_space<vmem>>, vector<1x256xf32>
    %529 = arith.mulf %528, %527 : vector<1x256xf32>
    %530 = arith.addf %456, %529 : vector<1x256xf32>
    %c0_328 = arith.constant 0 : index
    %531 = memref.load %arg4[%c0_328] : memref<1xf32, #tpu.memory_space<smem>>
    %532 = vector.broadcast %531 : f32 to vector<1x256xf32>
    %533 = arith.addf %530, %532 : vector<1x256xf32>
    %cst_329 = arith.constant 0.000000e+00 : f32
    %534 = vector.broadcast %cst_329 : f32 to vector<1x256xf32>
    %535 = arith.subf %534, %533 : vector<1x256xf32>
    %536 = math.exp %535 : vector<1x256xf32>
    %cst_330 = arith.constant 1.000000e+00 : f32
    %537 = vector.broadcast %cst_330 : f32 to vector<1x256xf32>
    %538 = arith.addf %537, %536 : vector<1x256xf32>
    %cst_331 = arith.constant 1.000000e+00 : f32
    %539 = vector.broadcast %cst_331 : f32 to vector<1x256xf32>
    %540 = arith.divf %539, %538 : vector<1x256xf32>
    %541 = vector.broadcast %540 : vector<1x256xf32> to vector<4x256xf32>
    %542 = arith.mulf %1, %541 : vector<4x256xf32>
    %c0_332 = arith.constant 0 : index
    %c0_333 = arith.constant 0 : index
    %c0_334 = arith.constant 0 : index
    %543 = vector.load %arg5[%c0_332, %c0_333, %c0_334] : memref<1x4x256xf32, #tpu.memory_space<vmem>>, vector<1x4x256xf32>
    %544 = vector.shape_cast %543 : vector<1x4x256xf32> to vector<4x256xf32>
    %545 = vector.shape_cast %542 : vector<4x256xf32> to vector<1x4x256xf32>
    tpu.vector_store %arg5[%c0_332, %c0_333, %c0_334], %545 {strides = array<i32>} : memref<1x4x256xf32, #tpu.memory_space<vmem>>, vector<1x4x256xf32>,
    return
  }
  func.func @transform_0(%arg0: i32) -> (i32, i32, i32) {
    %c0_i32 = arith.constant 0 : i32
    %c0_i32_0 = arith.constant 0 : i32
    %c0_i32_1 = arith.constant 0 : i32
    return %arg0, %c0_i32, %c0_i32_0 : i32, i32, i32
  }
  func.func @transform_1(%arg0: i32) -> (i32, i32) {
    %c0_i32 = arith.constant 0 : i32
    %c0_i32_0 = arith.constant 0 : i32
    %c0_i32_1 = arith.constant 0 : i32
    return %c0_i32, %c0_i32_0 : i32, i32
  }
  func.func @transform_2(%arg0: i32) -> (i32, i32) {
    %c0_i32 = arith.constant 0 : i32
    %c0_i32_0 = arith.constant 0 : i32
    %c0_i32_1 = arith.constant 0 : i32
    return %c0_i32, %c0_i32_0 : i32, i32
  }
  func.func @transform_3(%arg0: i32) -> i32 {
    %c0_i32 = arith.constant 0 : i32
    %c0_i32_0 = arith.constant 0 : i32
    return %c0_i32 : i32
  }
  func.func @transform_4(%arg0: i32) -> (i32, i32, i32) {
    %c0_i32 = arith.constant 0 : i32
    %c0_i32_0 = arith.constant 0 : i32
    %c0_i32_1 = arith.constant 0 : i32
    return %arg0, %c0_i32, %c0_i32_0 : i32, i32, i32
  }
}

</mosaic_0001>

<bundles_post_ra>
// kernel: tpu_custom_call.1
= control target key start
LH: loop header
LB: loop body
LE: loop exit
PB: predicated region body
PF: predicated region fallthrough
CT: control target
= control target key end

     0   :  { %s2520_s0 = inlined_call_operand.hbm [shape: f32[2,4,256], index: 0, kind: input, shape index: {}]   ;;  %s2521_s1 = inlined_call_operand.hbm [shape: f32[7,256], index: 1, kind: input, shape index: {}]   ;;  %s2522_s2 = inlined_call_operand.vmem [shape: f32[2,49], index: 2, kind: input, shape index: {}]   ;;  %s2523_s3 = inlined_call_operand.<no memory space> [shape: f32[1], index: 3, kind: input, shape index: {}]   ;;  %s2524_s4 = inlined_call_operand.hbm [shape: f32[2,4,256], index: 4, kind: output, shape index: {}]  }
   0x1   :  { %2537 = sst [smem:[#allocation17_spill]] %s2520_s0 }
   0x2   :  { %2538 = sst [smem:[#allocation18_spill]] %s2521_s1 }
   0x3   :  { %2539 = sst [smem:[#allocation19_spill]] %s2522_s2 }
   0x4   :  { %9 = sst [smem:[#allocation3]] %s2523_s3 }
   0x5   :  { %10 = vsyncpa [#allocation5], 0 }
   0x6   :  { %12 = vsyncpa [#allocation5 + $0x1], 0 }
   0x7   :  { %13 = vsyncpa [#allocation9], 0 }
   0x8   :  { %14 = vsyncpa [#allocation7], 0 }
   0x9   :  { %15 = vsyncpa [#allocation6], 0 }
   0xa   :  { %17 = vsyncpa [#allocation6 + $0x1], 0  ;;  %s1830_s17 = smov 0   ;;  %s1832_s18 = smov 0  }
   0xb   :  { %s1834_s19 = smov 0   ;;  %s1836_s20 = smov 0  }
   0xc LB: > { %s1851_s3 = sadd.s32 4294967295, %s1782_s20   ;;  %s1437_s21 = sadd.s32 4294967294, %s1782_s20   ;;  %s1782_s20 = sphi %s1836_s20, %s2569_s20   ;;  %s1778_s19 = sphi %s1834_s19, %s2568_s19   ;;  %s1774_s18 = sphi %s1832_s18, %s2567_s18   ;;  %s1770_s17 = sphi %s1830_s17, %s2566_s17  }
   0xd   : > { %p43_p0 = scmp.ne.s32.totalorder %s1774_s18, %s1770_s17  ;;  %p2525_p1 = scmp.eq.s32.totalorder %s1851_s3, 0 }
   0xe   : > { %p136_p3 = scmp.eq.s32.totalorder %s1437_s21, 1  ;;  %p1438_p5 = scmp.ge.s32.totalorder %s1782_s20, 1 }
   0xf   : > { %p1860_p4 = por %p2525_p1, %p43_p0  ;;  %p143_p7 = scmp.lt.s32.totalorder %s1782_s20, 3 }
  0x10   : > { %p1865_p6 = por %p136_p3, %p43_p0  ;;  %s1784_s25 = smov [#allocation8]  }
  0x11   : > { %s2540_s22 = scalar_select %p1860_p4, 1, 0 }
  0x12   : > { %s2541_s23 = scalar_select %p1865_p6, 1, 0 }
  0x13   : > { %p1870_p8 = pnand %p1438_p5, %p143_p7  ;;  %s156_s26 = sshll.u32 %s1784_s25, 4  ;;  %s157_s26 = int_to_ptr.vmem [resolvable:$true] %s156_s26 }
  0x14   : > { %s2543_s2 = sld [smem:[#allocation19_spill]]  ;;  %s1887_s5 = sadd.s32 1, %s1782_s20  }
  0x15   : > { %s2542_s24 = scalar_select %p1870_p8, 1, 0 }
  0x16   : > { %p1566_p10 = pneg %p1870_p8  ;;  %s27_s6 = ssub.s32 %s1782_s20, %s1887_s5 }
  0x17   : > { %s1652_s7 = scalar_lea.vmem %s157_s26, 256  ;;  %p1660_p5 = scmp.lt.s32.totalorder %s157_s26, %s157_s26 }
  0x18   : > { %p1882_p11 = pnand %p1566_p10, %p2525_p1  ;;  %p1653_p13 = scmp.ne.s32.totalorder %s157_s26, %s1652_s7 }
  0x19   : > { %p1661_p7 = scmp.lt.s32.totalorder %s1652_s7, %s1652_s7 }
  0x1a   : > { %s167_s29 = sshll.u32 %s2543_s2, 4  ;;  %p1643_p12 = pneg %p1882_p11  ;;  %s168_s29 = int_to_ptr.vmem [resolvable:$true] %s167_s29 }
  0x1b   : > { %p1662_p10 = por %p1661_p7, %p1660_p5 }
  0x1c   : > { %p1655_p0 = pnand %p1653_p13, %p1643_p12 }
  0x1e   : > { %p1656_p3 = pneg %p1655_p0 }
  0x20   : > { %p1663_p9 = pnand %p1662_p10, %p1656_p3 }
  0x22   : > { %1666 = shalt.err (!%p1663_p9)
}
  0x23   : > { %s2545_s1 = sld [smem:[#allocation18_spill]]  ;;  %s1667_s10 = scalar_lea.vmem %s168_s29, 32 }
  0x24   : > { %p1668_p1 = scmp.ne.s32.totalorder %s168_s29, %s1667_s10  ;;  %p1675_p13 = scmp.lt.s32.totalorder %s168_s29, %s168_s29 }
  0x25   : > { %p1676_p0 = scmp.lt.s32.totalorder %s1667_s10, %s1667_s10 }
  0x26   : > { %p1670_p2 = pnand %p1668_p1, %p1643_p12 }
  0x27   : > { %p1677_p4 = por %p1676_p0, %p1675_p13 }
  0x28   : > { %p1671_p6 = pneg %p1670_p2 }
  0x29   : > { %1569 = dma.hbm_to_vmem [thread:$0]  (!%p1882_p11), %s2545_s1, 256, %s157_s26, [#allocation9]  }
  0x2a   : > { %p1678_p8 = pnand %p1677_p4, %p1671_p6 }
  0x2c   : > { %1681 = shalt.err (!%p1678_p8)
}
  0x2d   : > { %s1785_s11 = smov [#allocation10]   ;;  %p28_p1 = scmp.eq.s32.totalorder %s27_s6, 0 }
  0x2e   : > { %1572 = dma.vmem_to_smem (!%p1882_p11), %s168_s29, 32, %s1785_s11, [#allocation7]  }
  0x2f   : > { %s30_s12 = sadd.s32 1, %s1778_s19  ;;  %p37_p2 = scmp.ne.s32.totalorder %s1778_s19, %s1774_s18 }
  0x30   : > { %p38_p9 = scmp.eq.s32.totalorder %s1782_s20, 0  ;;  %p2547_p6 = scmp.eq.s32.totalorder %s1851_s3, 1 }
  0x31   : > { %s1911_s13 = scalar_select %p28_p1, %s1778_s19, %s30_s12  }
  0x32   : > { %p39_p4 = por %p38_p9, %p37_p2  ;;  %p1915_p8 = por %p2547_p6, %p37_p2 }
  0x33   : > { %2546 = sst [smem:[#allocation16_spill]] %s1911_s13  ;;  %p1583_p12 = scmp.lt.s32.totalorder %s1782_s20, 2 }
  0x34   : > { %s2548_s14 = scalar_select %p1915_p8, 1, 0 }
  0x35   : > { %s181_s15 = sand.u32 1, %s1778_s19   ;;  %s1552_s21 = sshll.u32 %s1782_s20, 7 }
  0x36   : > { %s1442_s16 = sshll.u32 %s181_s15, 3  ;;  %s2549_s0 = sld [smem:[#allocation17_spill]] }
  0x37   : > { %s185_s28 = scalar_lea.vmem [#allocation4], %s1442_s16  ;;  %p1927_p11 = pnand %p1583_p12, %p39_p4 }
  0x38   : > { %s193_s29 = sshll.u32 %s185_s28, 4  ;;  %s182_s6 = scalar_lea.sflag [#allocation5], %s181_s15  ;;  %s194_s29 = int_to_ptr.vmem [resolvable:$true] %s193_s29 }
  0x39   : > { %p1684_p5 = pneg %p1927_p11 }
  0x3c   : > { %s1925_s27 = scalar_lea.hbm %s2549_s0, %s1552_s21  ;;  %s1687_s10 = scalar_lea.hbm %s2549_s0, 256 }
  0x3d   : > { %s1682_s7 = scalar_lea.hbm %s1925_s27, 128  ;;  %p1688_p13 = scmp.lt.s32.totalorder %s1925_s27, %s2549_s0 }
  0x3e   : > { %p1683_p3 = scmp.ne.s32.totalorder %s1925_s27, %s1682_s7  ;;  %p1689_p0 = scmp.lt.s32.totalorder %s1687_s10, %s1682_s7 }
  0x40   : > { %p1685_p7 = pnand %p1684_p5, %p1683_p3  ;;  %p1690_p1 = por %p1689_p0, %p1688_p13 }
  0x42   : > { %p1686_p10 = pneg %p1685_p7 }
  0x44   : > { %p1691_p2 = pnand %p1690_p1, %p1686_p10 }
  0x46   : > { %1694 = shalt.err (!%p1691_p2)
}
  0x47   : > { %s1695_s16 = scalar_lea.vmem %s194_s29, 128  ;;  %s1786_s15 = smov [#allocation4]  }
  0x48   : > { %p1696_p9 = scmp.ne.s32.totalorder %s194_s29, %s1695_s16  ;;  %s1700_s21 = sshll.u32 %s1786_s15, 4  ;;  %s1701_s21 = int_to_ptr.vmem [resolvable:$false] %s1700_s21 }
  0x49   : > { %s1702_s25 = scalar_lea.vmem %s1701_s21, 256  ;;  %p1703_p12 = scmp.lt.s32.totalorder %s194_s29, %s1701_s21 }
  0x4a   : > { %p1698_p4 = pnand %p1696_p9, %p1684_p5  ;;  %p1704_p3 = scmp.lt.s32.totalorder %s1702_s25, %s1695_s16 }
  0x4c   : > { %p1699_p6 = pneg %p1698_p4  ;;  %p1705_p7 = por %p1704_p3, %p1703_p12 }
  0x4e   : > { %p1706_p8 = pnand %p1705_p7, %p1699_p6 }
  0x50   : > { %1709 = shalt.err (!%p1706_p8)
}
  0x51   : > { %1576 = dma.hbm_to_vmem [thread:$0]  (!%p1927_p11), %s1925_s27, 128, %s194_s29, %s182_s6  }
  0x52   : > { %p2551_p10 = scmp.ne.s32.totalorder %s2542_s24, 0 }
  0x53   : > { %s1948_s26 = sand.u32 (!%p2551_p10), 1, %s1774_s18   ;;  %p2552_p8 = scmp.ne.s32.totalorder (!%p2551_p10), %s2540_s22, 0 }
  0x54   : > { %202 = sbr.rel (%p2551_p10) target bundleno = 594 (0x252), region = 36  ;;  %s2529_s28 = sshll.u32 (!%p2551_p10), %s1948_s26, 3 }
  0x55   : > { %s205_s7 = scalar_lea.sflag (!%p2551_p10), [#allocation5], %s1948_s26  ;;  %s1954_s8 = scalar_lea.vmem (!%p2551_p10), [#allocation4], %s2529_s28 }
  0x59   : > { %1753 = dma.done.wait (%p2552_p8), %s205_s7, 128  }
  0x5a   : > { %1755 = vsyncadd (%p2552_p8), %s205_s7, 4294967168  ;;  %p2553_p11 = scmp.eq.s32.totalorder %s1851_s3, 0 }
  0x5c   : > { %1757 = dma.done.wait (%p2553_p11), [#allocation9], 256   ;;  %p2554_p5 = pmov %p2553_p11 }
  0x5e   : > { %1759 = vsyncadd (%p2554_p5), [#allocation9], 4294967040  ;;  %p2555_p13 = pmov %p2554_p5 }
  0x5f   : > { %p2556_p0 = pmov %p2554_p5 }
  0x60   : > { %1761 = dma.done.wait (%p2555_p13), [#allocation7], 32  }
  0x61   : > { %1763 = vsyncadd (%p2556_p0), [#allocation7], 4294967264 }
  0x62   : > { %221 = sfence }
  0x63   : > { %v242_v0 = vld [vmem:[%s1954_s8] sm:$0xff]  ;;  %vm246_vm0 = vcmask 1043456   ;;  %v1787_v3 = vmov 0.0   ;;  %v284_v12 = vlaneseq  ;;  %v1788_v16 = vmov 1966171168   ;;  %s1453_s22 = sld [smem:[#allocation10 + $0xe]] }
  0x64   : > { %v244_v1 = vcombine.high %v242_v0, %v242_v0  ;;  %v247_v2 = vsel %vm246_vm0, %v242_v0, -inf  ;;  %277 = vst [vmem:[#allocation2] sm:$0xff] %v1787_v3  ;;  %v261_v4 = vsel %vm246_vm0, %v242_v0, 0.0  ;;  %v282_v17 = vunpack.c.l.s4 %v1788_v16  ;;  %s1451_s24 = sld [smem:[#allocation10 + $0x7]]  ;;  %s1789_s11 = smov 96  }
  0x65   : > { %v248_v5 = vrot.slane %v247_v2, 4  ;;  %v262_v7 = vrot.slane %v261_v4, 4  ;;  %v1969_v23 = vshrl.u32 %v284_v12, 7  ;;  %vm298_vm1 = vcmp.lt.s32.totalorder %v284_v12, 256  ;;  %s1481_s27 = sld [smem:[#allocation10 + $0x10]]  ;;  %s1790_s12 = smov 112  }
  0x66   : > { %v254_v6 = vsel %vm246_vm0, %v244_v1, -inf  ;;  %v268_v8 = vsel %vm246_vm0, %v244_v1, 0.0  ;;  %v283_v27 = vunpack.c.0.s8 %v282_v17  ;;  %s1465_s29 = sld [smem:[#allocation10 + $0x8]]  ;;  %s2558_s1 = smov 80   ;;  %vm340_vm2 = vcmask 916480  }
  0x67   : > { %v249_v9 = vmax.f32 %v247_v2, %v248_v5  ;;  %v255_v10 = vrot.slane %v254_v6, 4  ;;  %v269_v11 = vrot.slane %v268_v8, 4  ;;  %v263_v13 = vadd.f32 %v262_v7, %v261_v4  ;;  %s1507_s30 = sld [smem:[#allocation10 + $0xb]]  ;;  %s2559_s2 = smov 64  }
  0x68   : > { %v286_v35 = vsub.s32 %v283_v27, %v1969_v23  ;;  %s1479_s6 = sld [smem:[#allocation10 + $0x9]]  ;;  %vm361_vm3 = vcmask 785408   ;;  %vm382_vm4 = vcmask 654336   ;;  %vm407_vm5 = vcmask 523264   ;;  %p2562_p2 = scmp.ne.s32.totalorder %s2548_s14, 0 }
  0x69   : > { %v250_v14 = vrot.slane %v249_v9, 2  ;;  %v256_v15 = vmax.f32 %v254_v6, %v255_v10  ;;  %v270_v18 = vadd.f32 %v269_v11, %v268_v8  ;;  %v264_v19 = vrot.slane %v263_v13, 2  ;;  %s1469_s9 = sld [smem:[#allocation10 + $0x16]] }
  0x6a   : > { %v355_v45 = vstv %s1453_s22  ;;  %v334_v46 = vstv %s1451_s24  ;;  %s1467_s10 = sld [smem:[#allocation10 + $0xf]]  ;;  %s2530_s24 = smov 80   ;;  %vm428_vm6 = vcmask 392192   ;;  %vm449_vm7 = vcmask 261120  }
  0x6b   : > { %v251_v20 = vmax.f32 %v249_v9, %v250_v14  ;;  %v257_v21 = vrot.slane %v256_v15, 2  ;;  %v271_v22 = vrot.slane %v270_v18, 2  ;;  %v265_v24 = vadd.f32 %v264_v19, %v263_v13  ;;  %s1495_s16 = sld [smem:[#allocation10 + $0x11]] }
  0x6c   : > { %v641_v48 = vstv %s1481_s27  ;;  %v482_v49 = vstv %s1465_s29  ;;  %s1493_s15 = sld [smem:[#allocation10 + $0xa]]  ;;  %vm607_vm8 = vcmask 408576   ;;  %vm468_vm9 = vcmask 416768  }
  0x6d   : > { %v252_v25 = vrot.slane %v251_v20, 1  ;;  %v258_v26 = vmax.f32 %v256_v15, %v257_v21  ;;  %v272_v28 = vadd.f32 %v271_v22, %v270_v18  ;;  %v266_v29 = vrot.slane %v265_v24, 1  ;;  %s1452_s21 = sld [smem:[#allocation10 + $0x87]] }
  0x6e   : > { %v900_v54 = vstv %s1507_s30  ;;  %v621_v55 = vstv %s1479_s6  ;;  %s1455_s25 = sld [smem:[#allocation10 + $0x15]]  ;;  %vm746_vm10 = vcmask 400384   ;;  %vm1025_vm11 = vcmask 384000  }
  0x6f   : > { %v253_v30 = vmax.f32 %v251_v20, %v252_v25  ;;  %v259_v31 = vrot.slane %v258_v26, 1  ;;  %v273_v32 = vrot.slane %v272_v28, 1  ;;  %v267_v33 = vadd.f32 %v266_v29, %v265_v24  ;;  %s1466_s7 = sld [smem:[#allocation10 + $0x88]] }
  0x70   : > { %v522_v58 = vstv %s1469_s9  ;;  %v502_v59 = vstv %s1467_s10  ;;  %s1468_s22 = sld [smem:[#allocation10 + $0x8f]]  ;;  %vm1164_vm12 = vcmask 375808   ;;  %vm1303_vm13 = vcmask 367616  }
  0x71   : > { %v260_v34 = vmax.f32 %v258_v26, %v259_v31  ;;  %v274_v36 = vadd.f32 %v273_v32, %v272_v28  ;;  %v275_v37 = vmul.f32 0.25, %v267_v33  ;;  %v780_v62 = vstv %s1495_s16  ;;  %s1480_s27 = sld [smem:[#allocation10 + $0x89]] }
  0x72   : > { %v760_v63 = vstv %s1493_s15  ;;  %s1494_s29 = sld [smem:[#allocation10 + $0x8a]] }
  0x73   : > { %v280_v38 = vcombine.low %v253_v30, %v260_v34  ;;  %v276_v39 = vmul.f32 0.25, %v274_v36  ;;  %v345_v3 = vstv %s1452_s21  ;;  %s1454_s30 = sld [smem:[#allocation10 + $0x8e]] }
  0x74   : > { %v376_v4 = vstv %s1455_s25  ;;  %s1482_s6 = sld [smem:[#allocation10 + $0x90]] }
  0x75   : > { %v287_v40 = vrot.slane %v280_v38, %v286_v35  ;;  %v304_v41 = vcombine.low %v275_v37, %v276_v39  ;;  %v492_v7 = vstv %s1466_s7  ;;  %s1521_s9 = sld [smem:[#allocation10 + $0xc]] }
  0x76   : > { %v512_v8 = vstv %s1468_s22  ;;  %s1508_s10 = sld [smem:[#allocation10 + $0x8b]] }
  0x77   : > { %v294_v42 = vrot.slane %v287_v40, %v286_v35  ;;  %v311_v43 = vrot.slane %v304_v41, %v286_v35  ;;  %v631_v11 = vstv %s1480_s27  ;;  %s1470_s16 = sld [smem:[#allocation10 + $0x96]] }
  0x78   : > { %v770_v12 = vstv %s1494_s29  ;;  %s1456_s15 = sld [smem:[#allocation10 + $0x95]] }
  0x79   : > { %301 = vst.msk [vmem:[#allocation2 + $0x2] ss:$2 sm:$0x3] %vm298_vm1, %v294_v42  ;;  %v318_v44 = vrot.slane %v311_v43, %v286_v35  ;;  %v366_v15 = vstv %s1454_s30  ;;  %s1496_s21 = sld [smem:[#allocation10 + $0x91]] }
  0x7a   : > { %v651_v16 = vstv %s1482_s6  ;;  %s1483_s25 = sld [smem:[#allocation10 + $0x17]] }
  0x7b   : > { %321 = vst.msk [vmem:[#allocation2 + $0x3] ss:$2 sm:$0x3] %vm298_vm1, %v318_v44  ;;  %v1039_v19 = vstv %s1521_s9  ;;  %s1522_s7 = sld [smem:[#allocation10 + $0x8c]] }
  0x7c   : > { %v910_v20 = vstv %s1508_s10  ;;  %s1509_s22 = sld [smem:[#allocation10 + $0x12]] }
  0x7d   : > { %v532_v24 = vstv %s1470_s16  ;;  %s1457_s27 = sld [smem:[#allocation10 + $0x1c]] }
  0x7e   : > { %v387_v25 = vstv %s1456_s15  ;;  %s1535_s29 = sld [smem:[#allocation10 + $0xd]] }
  0x7f   : > { %v790_v28 = vstv %s1496_s21  ;;  %s1484_s30 = sld [smem:[#allocation10 + $0x97]]  ;;  %s2535_s21 = smov 64  }
  0x80   : > { %v1972_v47 = vld [vmem:[#allocation2] ss:$2 sm:$0x7]  ;;  %v661_v29 = vstv %s1483_s25  ;;  %s1471_s6 = sld [smem:[#allocation10 + $0x1d]] }
  0x81   : > { %v356_v50 = vmul.f32 %v355_v45, %v1972_v47  ;;  %v335_v51 = vmul.f32 %v334_v46, %v1972_v47  ;;  %v642_v52 = vmul.f32 %v641_v48, %v1972_v47  ;;  %v483_v53 = vmul.f32 %v482_v49, %v1972_v47  ;;  %s1510_s9 = sld [smem:[#allocation10 + $0x92]]  ;;  %v2026_v36 = vld [vmem:[#allocation2 + $0x2] ss:$2 sm:$0x7] }
  0x82   : > { %v901_v56 = vmul.f32 %v900_v54, %v1972_v47  ;;  %v622_v57 = vmul.f32 %v621_v55, %v1972_v47  ;;  %v523_v60 = vmul.f32 %v522_v58, %v1972_v47  ;;  %v503_v61 = vmul.f32 %v502_v59, %v1972_v47  ;;  %v1992_v2 = vld [vmem:[#allocation2 + $0x1] ss:$2 sm:$0x7]  ;;  %s1497_s10 = sld [smem:[#allocation10 + $0x18]] }
  0x83   : > { %358 = vrot.lane.b32.xlu1 %v356_v50, %s1789_s11  ;;  %337 = vrot.lane.b32.xlu0 %v335_v51, %s1790_s12  ;;  %v781_v0 = vmul.f32 %v780_v62, %v1972_v47  ;;  %v761_v1 = vmul.f32 %v760_v63, %v1972_v47  ;;  %v346_v5 = vmul.f32 %v345_v3, %v1992_v2  ;;  %v1049_v32 = vstv %s1522_s7  ;;  %s1536_s16 = sld [smem:[#allocation10 + $0x8d]]  ;;  %v799_v46 = vld [vmem:[#allocation2 + $0x2] ss:$2 sm:$0x3] }
  0x84   : > { %v377_v6 = vmul.f32 %v376_v4, %v1972_v47  ;;  %v493_v9 = vmul.f32 %v492_v7, %v1992_v2  ;;  %v513_v10 = vmul.f32 %v512_v8, %v1992_v2  ;;  %v632_v13 = vmul.f32 %v631_v11, %v1992_v2  ;;  %s1523_s15 = sld [smem:[#allocation10 + $0x13]]  ;;  %v2043_v55 = vld [vmem:[#allocation2 + $0x3] ss:$2 sm:$0x7] }
  0x85   : > { %v771_v14 = vmul.f32 %v770_v12, %v1992_v2  ;;  %v367_v17 = vmul.f32 %v366_v15, %v1992_v2  ;;  %v652_v18 = vmul.f32 %v651_v16, %v1992_v2  ;;  %v1040_v21 = vmul.f32 %v1039_v19, %v1972_v47  ;;  %s1472_s25 = sld [smem:[#allocation10 + $0x9d]] }
  0x86   : > { %v911_v22 = vmul.f32 %v910_v20, %v1992_v2  ;;  %v533_v26 = vmul.f32 %v532_v24, %v1992_v2  ;;  %v388_v27 = vmul.f32 %v387_v25, %v1992_v2  ;;  %v791_v30 = vmul.f32 %v790_v28, %v1992_v2  ;;  %s1458_s7 = sld [smem:[#allocation10 + $0x9c]] }
  0x87   : > { %644 = vrot.lane.b32.xlu1 %v642_v52, %s1789_s11  ;;  %485 = vrot.lane.b32.xlu0 %v483_v53, %s1790_s12  ;;  %v662_v31 = vmul.f32 %v661_v29, %v1972_v47  ;;  %v920_v33 = vstv %s1509_s22  ;;  %v1050_v34 = vmul.f32 %v1049_v32, %v1992_v2  ;;  %v401_v37 = vstv %s1457_s27  ;;  %s1498_s22 = sld [smem:[#allocation10 + $0x98]] }
  0x88   : > { %v921_v35 = vmul.f32 %v920_v33, %v1972_v47  ;;  %v1178_v38 = vstv %s1535_s29  ;;  %v402_v39 = vmul.f32 %v401_v37, %v2026_v36  ;;  %v671_v41 = vstv %s1484_s30  ;;  %s1485_s27 = sld [smem:[#allocation10 + $0x1e]] }
  0x89   : > { %v1179_v40 = vmul.f32 %v1178_v38, %v1972_v47  ;;  %v542_v42 = vstv %s1471_s6  ;;  %v672_v43 = vmul.f32 %v671_v41, %v1992_v2  ;;  %v930_v45 = vstv %s1510_s9  ;;  %s1524_s29 = sld [smem:[#allocation10 + $0x93]] }
  0x8a   : > { %v543_v44 = vmul.f32 %v542_v42, %v2026_v36  ;;  %v802_v48 = vstv %s1497_s10  ;;  %v931_v49 = vmul.f32 %v930_v45, %v1992_v2  ;;  %v1188_v51 = vstv %s1536_s16  ;;  %s1511_s30 = sld [smem:[#allocation10 + $0x19]] }
  0x8b   : > { %903 = vrot.lane.b32.xlu1 %v901_v56, %s1790_s12  ;;  %624 = vrot.lane.b32.xlu0 %v622_v57, %s1790_s12  ;;  %v803_v50 = vmul.f32 %v802_v48, %v799_v46  ;;  %v1059_v52 = vstv %s1523_s15  ;;  %v1189_v53 = vmul.f32 %v1188_v51, %v1992_v2  ;;  %v552_v56 = vstv %s1472_s25  ;;  %s1459_s6 = sld [smem:[#allocation10 + $0x23]] }
  0x8c   : > { %v1060_v54 = vmul.f32 %v1059_v52, %v1972_v47  ;;  %v412_v57 = vstv %s1458_s7  ;;  %v553_v58 = vmul.f32 %v552_v56, %v2043_v55  ;;  %s1537_s9 = sld [smem:[#allocation10 + $0x14]] }
  0x8d   : > { %v413_v59 = vmul.f32 %v412_v57, %v2043_v55  ;;  %s1486_s10 = sld [smem:[#allocation10 + $0x9e]] }
  0x8e   : > { %v681_v62 = vstv %s1485_s27  ;;  %s1512_s16 = sld [smem:[#allocation10 + $0x99]] }
  0x8f   : > { %525 = vrot.lane.b32.xlu1 %v523_v60, %s2530_s24  ;;  %505 = vrot.lane.b32.xlu0 %v503_v61, %s1789_s11  ;;  %v800_v60 = vld [vmem:[#allocation2 + $0x3] ss:$2 sm:$0x3]  ;;  %v812_v61 = vstv %s1498_s22  ;;  %s1499_s15 = sld [smem:[#allocation10 + $0x1f]]  ;;  %s2531_s22 = smov 48  }
  0x90   : > { %v813_v63 = vmul.f32 %v812_v61, %v800_v60  ;;  %v940_v3 = vstv %s1511_s30  ;;  %s1538_s25 = sld [smem:[#allocation10 + $0x94]] }
  0x91   : > { %s1525_s7 = sld [smem:[#allocation10 + $0x1a]] }
  0x92   : > { %v1198_v7 = vstv %s1537_s9  ;;  %s1474_s27 = sld [smem:[#allocation10 + $0xa4]] }
  0x93   : > { %783 = vrot.lane.b32.xlu1 %v781_v0, %s1789_s11  ;;  %763 = vrot.lane.b32.xlu0 %v761_v1, %s1790_s12  ;;  %v682_v0 = vmul.f32 %v681_v62, %v2026_v36  ;;  %v1069_v1 = vstv %s1524_s29  ;;  %s1460_s29 = sld [smem:[#allocation10 + $0xa3]] }
  0x94   : > { %v1070_v4 = vmul.f32 %v1069_v1, %v1992_v2  ;;  %s1500_s30 = sld [smem:[#allocation10 + $0x9f]] }
  0x95   : > { %v822_v15 = vstv %s1499_s15  ;;  %s1526_s9 = sld [smem:[#allocation10 + $0x9a]] }
  0x96   : > { %s1488_s15 = sld [smem:[#allocation10 + $0xa5]] }
  0x97   : > { %348 = vrot.lane.b32.xlu1 %v346_v5, %s1790_s12  ;;  %379 = vrot.lane.b32.xlu0 %v377_v6, %s2530_s24  ;;  %v941_v5 = vmul.f32 %v940_v3, %v2026_v36  ;;  %v422_v6 = vstv %s1459_s6  ;;  %v1079_v19 = vstv %s1525_s7  ;;  %s1487_s6 = sld [smem:[#allocation10 + $0x25]] }
  0x98   : > { %v423_v8 = vmul.f32 %v422_v6, %v2026_v36  ;;  %s1501_s7 = sld [smem:[#allocation10 + $0x26]] }
  0x99   : > { %v433_v24 = vstv %s1460_s29  ;;  %s2086_s29 = sld [smem:[#allocation10 + $0x80]] }
  0x9a   : > { %s2106_s28 = sld [smem:[#allocation10 + $0x84]] }
  0x9b   : > { %495 = vrot.lane.b32.xlu1 %v493_v9, %s1790_s12  ;;  %515 = vrot.lane.b32.xlu0 %v513_v10, %s1789_s11  ;;  %v1199_v9 = vmul.f32 %v1198_v7, %v1972_v47  ;;  %v691_v10 = vstv %s1486_s10  ;;  %s1513_s10 = sld [smem:[#allocation10 + $0x20]] }
  0x9c   : > { %v692_v12 = vmul.f32 %v691_v10, %v2043_v55  ;;  %s2140_s0 = sld [smem:[#allocation10 + $0x83]] }
  0x9d   : > { %v701_v28 = vstv %s1487_s6  ;;  %s1527_s6 = sld [smem:[#allocation10 + $0x21]] }
  0x9e   : > { %v842_v45 = vstv %s1501_s7  ;;  %s2121_s7 = sld [smem:[#allocation10 + $0x2]] }
  0x9f   : > { %634 = vrot.lane.b32.xlu1 %v632_v13, %s1790_s12  ;;  %773 = vrot.lane.b32.xlu0 %v771_v14, %s1790_s12  ;;  %v950_v14 = vstv %s1512_s16  ;;  %s1539_s16 = sld [smem:[#allocation10 + $0x1b]]  ;;  %v843_v48 = vmul.f32 %v842_v45, %v2026_v36 }
  0xa0   : > { %v951_v16 = vmul.f32 %v950_v14, %v2043_v55  ;;  %s2163_s13 = sld [smem:[#allocation10 + $0x2d]] }
  0xa1   : > { %v960_v32 = vstv %s1513_s10  ;;  %s2096_s10 = sld [smem:[#allocation10 + $0x81]] }
  0xa3   : > { %369 = vrot.lane.b32.xlu1 %v367_v17, %s1789_s11  ;;  %654 = vrot.lane.b32.xlu0 %v652_v18, %s1789_s11  ;;  %v823_v17 = vmul.f32 %v822_v15, %v2026_v36  ;;  %v1208_v18 = vstv %s1538_s25  ;;  %s1514_s25 = sld [smem:[#allocation10 + $0xa0]] }
  0xa4   : > { %v1209_v20 = vmul.f32 %v1208_v18, %v1992_v2 }
  0xa5   : > { %v1218_v37 = vstv %s1539_s16  ;;  %s2102_s16 = sld [smem:[#allocation10 + $0xab]] }
  0xa7   : > { %1042 = vrot.lane.b32.xlu1 %v1040_v21, %s1790_s12  ;;  %913 = vrot.lane.b32.xlu0 %v911_v22, %s1790_s12  ;;  %v1080_v21 = vmul.f32 %v1079_v19, %v2026_v36  ;;  %v572_v22 = vstv %s1474_s27  ;;  %s2084_s27 = sld [smem:[#allocation10]]  ;;  %v478_v6 = vstv %s2096_s10 }
  0xa8   : > { %v573_v25 = vmul.f32 %v572_v22, %v2043_v55  ;;  %s2198_s10 = sld [smem:[#allocation10 + $0x29]] }
  0xab   : > { %535 = vrot.lane.b32.xlu1 %v533_v26, %s2530_s24  ;;  %390 = vrot.lane.b32.xlu0 %v388_v27, %s2530_s24  ;;  %v434_v26 = vmul.f32 %v433_v24, %v2043_v55  ;;  %v832_v27 = vstv %s1500_s30  ;;  %s2092_s30 = sld [smem:[#allocation10 + $0x9b]]  ;;  %v592_v56 = vstv %s2102_s16 }
  0xac   : > { %v833_v29 = vmul.f32 %v832_v27, %v2043_v55  ;;  %v593_v60 = vmul.f32 %v592_v56, %v2043_v55  ;;  %s2146_s16 = sld [smem:[#allocation10 + $0xac]]  ;;  %v756_v24 = vstv %s2140_s0 }
  0xad   : > { %s2211_s0 = sld [smem:[#allocation10 + $0xa8]] }
  0xaf   : > { %793 = vrot.lane.b32.xlu1 %v791_v30, %s1789_s11  ;;  %664 = vrot.lane.b32.xlu0 %v662_v31, %s2530_s24  ;;  %v702_v30 = vmul.f32 %v701_v28, %v2026_v36  ;;  %v1089_v31 = vstv %s1526_s9  ;;  %s2094_s9 = sld [smem:[#allocation10 + $0x1]] }
  0xb0   : > { %v1090_v33 = vmul.f32 %v1089_v31, %v2043_v55 }
  0xb3   : > { %1052 = vrot.lane.b32.xlu1 %v1050_v34, %s1790_s12  ;;  %923 = vrot.lane.b32.xlu0 %v921_v35, %s1789_s11  ;;  %v961_v34 = vmul.f32 %v960_v32, %v2026_v36 }
  0xb7   : > { %404 = vrot.lane.b32.xlu1 %v402_v39, %s2535_s21  ;;  %1181 = vrot.lane.b32.xlu0 %v1179_v40, %s1790_s12  ;;  %v1219_v39 = vmul.f32 %v1218_v37, %v2026_v36  ;;  %v711_v40 = vstv %s1488_s15  ;;  %s1462_s15 = sld [smem:[#allocation10 + $0xaa]] }
  0xb8   : > { %v712_v42 = vmul.f32 %v711_v40, %v2043_v55 }
  0xbb   : > { %674 = vrot.lane.b32.xlu1 %v672_v43, %s2530_s24  ;;  %545 = vrot.lane.b32.xlu0 %v543_v44, %s2535_s21  ;;  %v970_v44 = vstv %s1514_s25  ;;  %s2115_s25 = sld [smem:[#allocation10 + $0x2c]] }
  0xbc   : > { %v971_v46 = vmul.f32 %v970_v44, %v2043_v55 }
  0xbd   : > { %v454_v57 = vstv %s1462_s15  ;;  %s2150_s15 = sld [smem:[#allocation10 + $0x22]] }
  0xbe   : > { %v455_v61 = vmul.f32 %v454_v57, %v2043_v55 }
  0xbf   : > { %933 = vrot.lane.b32.xlu1 %v931_v49, %s1789_s11  ;;  %805 = vrot.lane.b32.xlu0 %v803_v50, %s2530_s24  ;;  %v1228_v49 = vstv %s2092_s30  ;;  %v1099_v50 = vstv %s1527_s6  ;;  %s2129_s30 = sld [smem:[#allocation10 + $0xa1]] }
  0xc0   : > { %s2132_s6 = sld [smem:[#allocation10 + $0x27]] }
  0xc3   : > { %1191 = vrot.lane.b32.xlu1 %v1189_v53, %s1790_s12  ;;  %1062 = vrot.lane.b32.xlu0 %v1060_v54, %s1789_s11  ;;  %s1473_s12 = sld [smem:[#allocation10 + $0x24]]  ;;  %v1229_v53 = vmul.f32 %v1228_v49, %v2043_v55  ;;  %v1100_v54 = vmul.f32 %v1099_v50, %v2026_v36 }
  0xc7   : > { %555 = vrot.lane.b32.xlu1 %v553_v58, %s2535_s21  ;;  %415 = vrot.lane.b32.xlu0 %v413_v59, %s2535_s21 }
  0xc9   : > { %v562_v11 = vstv %s1473_s12  ;;  %s1461_s12 = sld [smem:[#allocation10 + $0x2a]] }
  0xca   : > { %v563_v13 = vmul.f32 %v562_v11, %v2026_v36  ;;  %v896_v11 = vstv %s2106_s28  ;;  %s2191_s28 = sld [smem:[#allocation10 + $0xad]] }
  0xcb   : > { %815 = vrot.lane.b32.xlu1 %v813_v63, %s2530_s24  ;;  %684 = vrot.lane.b32.xlu0 %v682_v0, %s2535_s21  ;;  %v721_v63 = vstv %s2115_s25  ;;  %v326_v0 = vstv %s2084_s27  ;;  %s2169_s27 = sld [smem:[#allocation10 + $0xa2]] }
  0xcc   : > { %v327_v10 = vmul.f32 %v326_v0, %v1972_v47  ;;  %s2271_s25 = sld [smem:[#allocation10 + $0xaf]] }
  0xcf   : > { %1072 = vrot.lane.b32.xlu1 %v1070_v4, %s1789_s11  ;;  %943 = vrot.lane.b32.xlu0 %v941_v5, %s2530_s24  ;;  %v443_v35 = vstv %s1461_s12  ;;  %s2533_s12 = smov 32   ;;  %v330_v4 = vstv %s2086_s29  ;;  %s2175_s29 = sld [smem:[#allocation10 + $0x28]] }
  0xd0   : > { %v444_v38 = vmul.f32 %v443_v35, %v2026_v36  ;;  %v474_v5 = vstv %s2094_s9  ;;  %v331_v14 = vmul.f32 %v330_v4, %v1992_v2  ;;  %s2185_s9 = sld [smem:[#allocation10 + $0x2e]]  ;;  %v757_v35 = vmul.f32 %v756_v24, %v1992_v2 }
  0xd1   : > { %v475_v15 = vmul.f32 %v474_v5, %v1972_v47  ;;  %v872_v0 = vstv %s2191_s28  ;;  %s1553_s28 = sshll.u32 %s1851_s3, 7 }
  0xd3   : > { %425 = vrot.lane.b32.xlu1 %v423_v8, %s2531_s22  ;;  %1201 = vrot.lane.b32.xlu0 %v1199_v9, %s1789_s11  ;;  %v722_v9 = vmul.f32 %v721_v63, %v2026_v36 }
  0xd5   : > { %v1119_v49 = vstv %s2175_s29  ;;  %s1800_s29 = smov 45  }
  0xd6   : > { %v1000_v63 = vstv %s2185_s9  ;;  %v1120_v5 = vmul.f32 %v1119_v49, %v2026_v36  ;;  %s1308_s9 = sld [smem:[#allocation3]] }
  0xd7   : > { %694 = vrot.lane.b32.xlu1 %v692_v12, %s2535_s21  ;;  %565 = vrot.lane.b32.xlu0 %v563_v13, %s2531_s22  ;;  %v1109_v12 = vstv %s2129_s30  ;;  %v980_v13 = vstv %s2132_s6  ;;  %s2294_s30 = sld [smem:[#allocation10 + $0x30]] }
  0xd8   : > { %v981_v27 = vmul.f32 %v980_v13, %v2026_v36  ;;  %s1533_s6 = sld [smem:[#allocation10 + $0x6]] }
  0xdb   : > { %953 = vrot.lane.b32.xlu1 %v951_v16, %s2530_s24  ;;  %825 = vrot.lane.b32.xlu0 %v823_v17, %s2535_s21  ;;  %v479_v16 = vmul.f32 %v478_v6, %v1992_v2  ;;  %v1258_v6 = vstv %s2198_s10  ;;  %s2561_s10 = sshll.u32 %s1948_s26, 3 }
  0xdf   : > { %1211 = vrot.lane.b32.xlu1 %v1209_v20, %s1789_s11  ;;  %1082 = vrot.lane.b32.xlu0 %v1080_v21, %s2530_s24  ;;  %s1475_s11 = sld [smem:[#allocation10 + $0x2b]]  ;;  %v613_v20 = vstv %s2121_s7 }
  0xe0   : > { %v614_v31 = vmul.f32 %v613_v20, %v1972_v47  ;;  %s2277_s7 = sld [smem:[#allocation10 + $0xa9]] }
  0xe3   : > { %575 = vrot.lane.b32.xlu1 %v573_v25, %s2531_s22  ;;  %436 = vrot.lane.b32.xlu0 %v434_v26, %s2531_s22  ;;  %v897_v25 = vmul.f32 %v896_v11, %v1992_v2  ;;  %v1110_v26 = vmul.f32 %v1109_v12, %v2043_v55 }
  0xe5   : > { %v582_v41 = vstv %s1475_s11  ;;  %s2104_s11 = sld [smem:[#allocation10 + $0x4]] }
  0xe6   : > { %v583_v43 = vmul.f32 %v582_v41, %v2026_v36  ;;  %v862_v41 = vstv %s2163_s13  ;;  %s2250_s13 = sld [smem:[#allocation10 + $0x2f]] }
  0xe7   : > { %835 = vrot.lane.b32.xlu1 %v833_v29, %s2535_s21  ;;  %704 = vrot.lane.b32.xlu0 %v702_v30, %s2531_s22  ;;  %v731_v29 = vstv %s2146_s16  ;;  %v1238_v30 = vstv %s2150_s15  ;;  %s1534_s16 = sld [smem:[#allocation10 + $0x86]]  ;;  %s1795_s15 = smov 50  }
  0xe8   : > { %v1239_v44 = vmul.f32 %v1238_v30, %v2026_v36 }
  0xeb   : > { %1092 = vrot.lane.b32.xlu1 %v1090_v33, %s2530_s24  ;;  %963 = vrot.lane.b32.xlu0 %v961_v34, %s2535_s21  ;;  %v892_v7 = vstv %s2104_s11  ;;  %s2267_s11 = sld [smem:[#allocation10 + $0x85]] }
  0xec   : > { %v893_v17 = vmul.f32 %v892_v7, %v1972_v47 }
  0xef   : > { %446 = vrot.lane.b32.xlu1 %v444_v38, %s2533_s12  ;;  %1221 = vrot.lane.b32.xlu0 %v1219_v39, %s2530_s24  ;;  %s2112_s24 = sld [smem:[#allocation10 + $0xa6]]  ;;  %v332_v38 = vadd.f32 %v331_v14, %v327_v10  ;;  %v480_v39 = vadd.f32 %v479_v16, %v475_v15  ;;  %v1001_v15 = vmul.f32 %v1000_v63, %v2026_v36 }
  0xf0   : > { %v873_v16 = vmul.f32 %v872_v0, %v2043_v55 }
  0xf3   : > { %714 = vrot.lane.b32.xlu1 %v712_v42, %s2531_s22  ;;  %585 = vrot.lane.b32.xlu0 %v583_v43, %s2533_s12  ;;  %s2123_s22 = sld [smem:[#allocation10 + $0x82]]  ;;  %s2557_s12 = smov 48   ;;  %v2213_v42 = vadd.f32 %v897_v25, %v893_v17  ;;  %v732_v43 = vmul.f32 %v731_v29, %v2043_v55  ;;  %v1259_v25 = vmul.f32 %v1258_v6, %v2026_v36 }
  0xf5   : > { %v2117_v51 = vpop.permute.xlu1 %358  ;;  %v2119_v52 = vpop.permute.xlu0 %337  ;;  %v852_v62 = vstv %s2112_s24  ;;  %s2560_s24 = smov 32  }
  0xf6   : > { %v853_v8 = vmul.f32 %v852_v62, %v2043_v55  ;;  %v339_v28 = vrot.slane %v2119_v52, 1 }
  0xf7   : > { %973 = vrot.lane.b32.xlu1 %v971_v46, %s2535_s21  ;;  %845 = vrot.lane.b32.xlu0 %v843_v48, %s2557_s12  ;;  %s2138_s21 = sld [smem:[#allocation10 + $0x3]]  ;;  %v1248_v48 = vstv %s2169_s27  ;;  %s1799_s27 = smov 46  }
  0xf8   : > { %v341_v45 = vsel %vm340_vm2, %v2119_v52, %v339_v28  ;;  %v1249_v4 = vmul.f32 %v1248_v48, %v2043_v55 }
  0xf9   : > { %v2134_v58 = vpop.permute.xlu1 %644  ;;  %v2136_v59 = vpop.permute.xlu0 %485  ;;  %v617_v21 = vstv %s2123_s22  ;;  %v343_v52 = vadd.f32 %v341_v45, %v332_v38  ;;  %s2261_s22 = sld [smem:[#allocation10 + $0x5]] }
  0xfa   : > { %v618_v32 = vmul.f32 %v617_v21, %v1992_v2  ;;  %v487_v46 = vrot.slane %v2136_v59, 1  ;;  %v646_v11 = vrot.slane %v2134_v58, 1  ;;  %v1129_v21 = vstv %s2211_s0  ;;  %s241_s0 = scalar_lea.vmem [#allocation11], %s2561_s10 }
  0xfb   : > { %1231 = vrot.lane.b32.xlu1 %v1229_v53, %s2558_s1  ;;  %1102 = vrot.lane.b32.xlu0 %v1100_v54, %s2559_s2  ;;  %s2157_s1 = sld [smem:[#allocation10 + $0xa7]] }
  0xfc   : > { %v619_v50 = vadd.f32 %v618_v32, %v614_v31  ;;  %v488_v7 = vsel %vm340_vm2, %v2136_v59, %v487_v46  ;;  %v647_v29 = vsel %vm361_vm3, %v2134_v58, %v646_v11 }
  0xfd   : > { %v2153_v1 = vpop.permute.xlu1 %903  ;;  %v2155_v3 = vpop.permute.xlu0 %624  ;;  %v752_v22 = vstv %s2138_s21  ;;  %s2256_s21 = sld [smem:[#allocation10 + $0xae]] }
  0xfe   : > { %v753_v34 = vmul.f32 %v752_v22, %v1972_v47  ;;  %v490_v22 = vadd.f32 %v488_v7, %v480_v39 }
  0xff   : > { %595 = vrot.lane.b32.xlu1 %v593_v60, %s2560_s24  ;;  %457 = vrot.lane.b32.xlu0 %v455_v61, %s2560_s24  ;;  %v863_v60 = vmul.f32 %v862_v41, %v2026_v36  ;;  %v360_v61 = vrot.slane %v2117_v51, 1 }
 0x100   : > { %v758_v53 = vadd.f32 %v757_v35, %v753_v34  ;;  %v1130_v35 = vmul.f32 %v1129_v21, %v2043_v55  ;;  %v1268_v21 = vstv %s2277_s7 }
 0x101   : > { %v2181_v18 = vpop.permute.xlu1 %525  ;;  %v2183_v19 = vpop.permute.xlu0 %505  ;;  %v990_v40 = vstv %s2157_s1  ;;  %v362_v17 = vsel %vm361_vm3, %v2117_v51, %v360_v61  ;;  %s1796_s1 = smov 51  }
 0x102   : > { %v991_v57 = vmul.f32 %v990_v40, %v2043_v55  ;;  %v507_v20 = vrot.slane %v2183_v19, 1  ;;  %v527_v30 = vrot.slane %v2181_v18, 1 }
 0x103   : > { %855 = vrot.lane.b32.xlu1 %v853_v8, %s2557_s12  ;;  %724 = vrot.lane.b32.xlu0 %v722_v9, %s2560_s24  ;;  %v626_v8 = vrot.slane %v2155_v3, 1  ;;  %v1010_v6 = vstv %s2256_s21 }
 0x104   : > { %v528_v46 = vsel %vm382_vm4, %v2181_v18, %v527_v30  ;;  %v1139_v18 = vstv %s2250_s13  ;;  %s1345_s13 = sshll.u32 %s241_s0, 4  ;;  %s1346_s13 = int_to_ptr.vmem [resolvable:$true] %s1345_s13 }
 0x105   : > { %v2205_v33 = vpop.permute.xlu1 %783  ;;  %v764_v37 = vpop.permute.xlu0 %763  ;;  %s1710_s7 = scalar_lea.vmem %s1346_s13, 128 }
 0x106   : > { %v765_v9 = vrot.slane %v764_v37, 1  ;;  %p1711_p1 = scmp.ne.s32.totalorder %s1346_s13, %s1710_s7 }
 0x107   : > { %1112 = vrot.lane.b32.xlu1 %v1110_v26, %s2559_s2  ;;  %983 = vrot.lane.b32.xlu0 %v981_v27, %s2557_s12  ;;  %v627_v26 = vsel %vm340_vm2, %v2155_v3, %v626_v8  ;;  %v508_v3 = vsel %vm361_vm3, %v2183_v19, %v507_v20 }
 0x108   : > { %v766_v51 = vsel %vm340_vm2, %v764_v37, %v765_v9  ;;  %v785_v37 = vrot.slane %v2205_v33, 1  ;;  %v629_v40 = vadd.f32 %v627_v26, %v619_v50  ;;  %p1712_p9 = pnand %p1711_p1, %p2562_p2 }
 0x109   : > { %v349_v54 = vpop.permute.xlu1 %348  ;;  %v2224_v56 = vpop.permute.xlu0 %379  ;;  %v768_v58 = vadd.f32 %v766_v51, %v758_v53 }
 0x10a   : > { %v350_v62 = vrot.slane %v349_v54, 1  ;;  %p1713_p4 = pneg %p1712_p9 }
 0x10b   : > { %734 = vrot.lane.b32.xlu1 %v732_v43, %s2560_s24  ;;  %1241 = vrot.lane.b32.xlu0 %v1239_v44, %s2559_s2  ;;  %v905_v43 = vrot.slane %v2153_v1, 1 }
 0x10c   : > { %v351_v10 = vsel %vm340_vm2, %v349_v54, %v350_v62 }
 0x10d   : > { %v353_v12 = vadd.f32 %v351_v10, %v343_v52  ;;  %v496_v13 = vpop.permute.xlu1 %495  ;;  %v516_v14 = vpop.permute.xlu0 %515 }
 0x10e   : > { %v497_v59 = vrot.slane %v496_v13, 1  ;;  %v517_v28 = vrot.slane %v516_v14, 1 }
 0x10f   : > { %993 = vrot.lane.b32.xlu1 %v991_v57, %s2557_s12  ;;  %865 = vrot.lane.b32.xlu0 %v863_v60, %s2560_s24  ;;  %v364_v24 = vadd.f32 %v362_v17, %v353_v12  ;;  %v786_v57 = vsel %vm361_vm3, %v2205_v33, %v785_v37  ;;  %v381_v60 = vrot.slane %v2224_v56, 1  ;;  %v1035_v17 = vstv %s2267_s11  ;;  %s1343_s11 = scalar_lea.hbm %s2524_s4, %s1553_s28 }
 0x110   : > { %v498_v27 = vsel %vm340_vm2, %v496_v13, %v497_v59  ;;  %v518_v44 = vsel %vm361_vm3, %v516_v14, %v517_v28  ;;  %v1031_v14 = vstv %s2261_s22  ;;  %v1149_v59 = vstv %s2271_s25  ;;  %s1331_s25 = scalar_lea.sflag [#allocation6], %s1948_s26 }
 0x111   : > { %v500_v31 = vadd.f32 %v498_v27, %v490_v22  ;;  %v635_v32 = vpop.permute.xlu1 %634  ;;  %v774_v34 = vpop.permute.xlu0 %773  ;;  %v383_v11 = vsel %vm382_vm4, %v2224_v56, %v381_v60  ;;  %v1150_v27 = vmul.f32 %v1149_v59, %v2043_v55  ;;  %v1269_v28 = vmul.f32 %v1268_v21, %v2043_v55 }
 0x112   : > { %v636_v38 = vrot.slane %v635_v32, 1  ;;  %v775_v39 = vrot.slane %v774_v34, 1 }
 0x113   : > { %v510_v41 = vadd.f32 %v508_v3, %v500_v31  ;;  %1251 = vrot.lane.b32.xlu1 %v1249_v4, %s2559_s2  ;;  %1122 = vrot.lane.b32.xlu0 %v1120_v5, %s2557_s12  ;;  %s2287_s2 = sld [smem:[#allocation10 + $0xb0]]  ;;  %v906_v4 = vsel %vm340_vm2, %v2153_v1, %v905_v43  ;;  %v1140_v1 = vmul.f32 %v1139_v18, %v2026_v36 }
 0x114   : > { %v637_v19 = vsel %vm340_vm2, %v635_v32, %v636_v38  ;;  %v776_v45 = vsel %vm340_vm2, %v774_v34, %v775_v39  ;;  %v908_v13 = vadd.f32 %v906_v4, %v2213_v42  ;;  %v1032_v42 = vmul.f32 %v1031_v14, %v1972_v47 }
 0x115   : > { %v520_v48 = vadd.f32 %v518_v44, %v510_v41  ;;  %v639_v49 = vadd.f32 %v637_v19, %v629_v40  ;;  %v778_v50 = vadd.f32 %v776_v45, %v768_v58  ;;  %v370_v53 = vpop.permute.xlu1 %369  ;;  %v655_v54 = vpop.permute.xlu0 %654  ;;  %v1278_v34 = vstv %s2294_s30 }
 0x116   : > { %v371_v61 = vrot.slane %v370_v53, 1  ;;  %v656_v62 = vrot.slane %v655_v54, 1  ;;  %v1279_v43 = vmul.f32 %v1278_v34, %v2026_v36  ;;  %v1174_v4 = vstv %s1534_s16 }
 0x117   : > { %v649_v63 = vadd.f32 %v647_v29, %v639_v49  ;;  %1003 = vrot.lane.b32.xlu1 %v1001_v15, %s2560_s24  ;;  %875 = vrot.lane.b32.xlu0 %v873_v16, %s2560_s24  ;;  %v530_v0 = vadd.f32 %v528_v46, %v520_v48  ;;  %v788_v52 = vadd.f32 %v786_v57, %v778_v50 }
 0x118   : > { %v372_v33 = vsel %vm361_vm3, %v370_v53, %v371_v61  ;;  %v657_v5 = vsel %vm361_vm3, %v655_v54, %v656_v62  ;;  %v1011_v16 = vmul.f32 %v1010_v6, %v2043_v55 }
 0x119   : > { %v374_v7 = vadd.f32 %v372_v33, %v364_v24  ;;  %v659_v8 = vadd.f32 %v657_v5, %v649_v63  ;;  %v1043_v9 = vpop.permute.xlu1 %1042  ;;  %v914_v10 = vpop.permute.xlu0 %913  ;;  %v1288_v29 = vstv %s2287_s2  ;;  %s1801_s2 = smov [#allocation11]  }
 0x11a   : > { %v915_v12 = vrot.slane %v914_v10, 1  ;;  %v1044_v30 = vrot.slane %v1043_v9, 1  ;;  %v1289_v41 = vmul.f32 %v1288_v29, %v2043_v55  ;;  %s1714_s3 = sshll.u32 %s1801_s2, 4  ;;  %s1715_s3 = int_to_ptr.vmem [resolvable:$false] %s1714_s3 }
 0x11b   : > { %1261 = vrot.lane.b32.xlu1 %v1259_v25, %s2557_s12  ;;  %1132 = vrot.lane.b32.xlu0 %v1130_v35, %s2557_s12  ;;  %v385_v15 = vadd.f32 %v383_v11, %v374_v7  ;;  %v1036_v25 = vmul.f32 %v1035_v17, %v1992_v2  ;;  %s1716_s30 = scalar_lea.vmem %s1715_s3, 256  ;;  %p1717_p6 = scmp.lt.s32.totalorder %s1346_s13, %s1715_s3 }
 0x11c   : > { %v916_v20 = vsel %vm340_vm2, %v914_v10, %v915_v12  ;;  %v1045_v44 = vsel %vm340_vm2, %v1043_v9, %v1044_v30  ;;  %v1175_v9 = vmul.f32 %v1174_v4, %v1992_v2  ;;  %p1718_p12 = scmp.lt.s32.totalorder %s1716_s30, %s1710_s7 }
 0x11d   : > { %v918_v56 = vadd.f32 %v916_v20, %v908_v13  ;;  %v536_v22 = vpop.permute.xlu1 %535  ;;  %v391_v24 = vpop.permute.xlu0 %390  ;;  %v1037_v58 = vadd.f32 %v1036_v25, %v1032_v42 }
 0x11e   : > { %v537_v26 = vrot.slane %v536_v22, 1  ;;  %v392_v51 = vrot.slane %v391_v24, 1  ;;  %p1719_p3 = por %p1718_p12, %p1717_p6 }
 0x11f   : > { %1142 = vrot.lane.b32.xlu1 %v1140_v1, %s2560_s24  ;;  %1013 = vrot.lane.b32.xlu0 %v1011_v16, %s2560_s24  ;;  %v1047_v57 = vadd.f32 %v1045_v44, %v1037_v58 }
 0x120   : > { %v538_v31 = vsel %vm382_vm4, %v536_v22, %v537_v26  ;;  %v393_v32 = vsel %vm382_vm4, %v391_v24, %v392_v51  ;;  %p1720_p7 = pnand %p1719_p3, %p1713_p4 }
 0x121   : > { %v2318_v35 = vadd.f32 %v538_v31, %v530_v0  ;;  %v395_v3 = vadd.f32 %v393_v32, %v385_v15  ;;  %v794_v37 = vpop.permute.xlu1 %793  ;;  %v665_v38 = vpop.permute.xlu0 %664 }
 0x122   : > { %v795_v39 = vrot.slane %v794_v37, 1  ;;  %v666_v40 = vrot.slane %v665_v38, 1 }
 0x123   : > { %1152 = vrot.lane.b32.xlu1 %v1150_v27, %s2560_s24  ;;  %1271 = vrot.lane.b32.xlu0 %v1269_v28, %s2557_s12 }
 0x124   : > { %v796_v19 = vsel %vm361_vm3, %v794_v37, %v795_v39  ;;  %v667_v45 = vsel %vm382_vm4, %v665_v38, %v666_v40 }
 0x125   : > { %v798_v46 = vadd.f32 %v796_v19, %v788_v52  ;;  %v669_v48 = vadd.f32 %v667_v45, %v659_v8  ;;  %v1053_v49 = vpop.permute.xlu1 %1052  ;;  %v924_v50 = vpop.permute.xlu0 %923  ;;  %v1170_v52 = vstv %s1533_s6 }
 0x126   : > { %v1054_v53 = vrot.slane %v1053_v49, 1  ;;  %v925_v54 = vrot.slane %v924_v50, 1  ;;  %v1171_v8 = vmul.f32 %v1170_v52, %v1972_v47 }
 0x127   : > { %1291 = vrot.lane.b32.xlu1 %v1289_v41, %s2560_s24  ;;  %1281 = vrot.lane.b32.xlu0 %v1279_v43, %s2560_s24  ;;  %s1797_s24 = smov 49  }
 0x128   : > { %v1055_v36 = vsel %vm340_vm2, %v1053_v49, %v1054_v53  ;;  %v926_v55 = vsel %vm361_vm3, %v924_v50, %v925_v54  ;;  %v1176_v16 = vadd.f32 %v1175_v9, %v1171_v8 }
 0x129   : > { %v1057_v60 = vadd.f32 %v1055_v36, %v1047_v57  ;;  %v928_v61 = vadd.f32 %v926_v55, %v918_v56  ;;  %v405_v62 = vpop.permute.xlu1 %404  ;;  %v1182_v63 = vpop.permute.xlu0 %1181 }
 0x12a   : > { %v406_v0 = vrot.slane %v405_v62, 7  ;;  %v1183_v10 = vrot.slane %v1182_v63, 1 }
 0x12c   : > { %v408_v18 = vsel %vm407_vm5, %v406_v0, %v405_v62  ;;  %v1184_v17 = vsel %vm340_vm2, %v1182_v63, %v1183_v10 }
 0x12d   : > { %v2332_v33 = vadd.f32 %v408_v18, %v395_v3  ;;  %v675_v5 = vpop.permute.xlu1 %674  ;;  %v2334_v6 = vpop.permute.xlu0 %545  ;;  %v1186_v42 = vadd.f32 %v1184_v17, %v1176_v16 }
 0x12e   : > { %v676_v7 = vrot.slane %v675_v5, 1 }
 0x130   : > { %v677_v11 = vsel %vm382_vm4, %v675_v5, %v676_v7  ;;  %v547_v5 = vrot.slane %v2334_v6, 7 }
 0x131   : > { %v2339_v12 = vadd.f32 %v677_v11, %v669_v48  ;;  %v934_v1 = vpop.permute.xlu1 %933  ;;  %v806_v13 = vpop.permute.xlu0 %805 }
 0x132   : > { %v935_v14 = vrot.slane %v934_v1, 1  ;;  %v807_v15 = vrot.slane %v806_v13, 7  ;;  %v548_v11 = vsel %vm407_vm5, %v547_v5, %v2334_v6 }
 0x134   : > { %v936_v20 = vsel %vm361_vm3, %v934_v1, %v935_v14  ;;  %v808_v59 = vsel %vm382_vm4, %v807_v15, %v806_v13 }
 0x135   : > { %v938_v21 = vadd.f32 %v936_v20, %v928_v61  ;;  %v810_v47 = vadd.f32 %v808_v59, %v798_v46  ;;  %v1192_v56 = vpop.permute.xlu1 %1191  ;;  %v1063_v2 = vpop.permute.xlu0 %1062 }
 0x136   : > { %v1193_v22 = vrot.slane %v1192_v56, 1  ;;  %v1064_v24 = vrot.slane %v1063_v2, 1 }
 0x138   : > { %v1194_v26 = vsel %vm340_vm2, %v1192_v56, %v1193_v22  ;;  %v1065_v51 = vsel %vm361_vm3, %v1063_v2, %v1064_v24 }
 0x139   : > { %v1196_v25 = vadd.f32 %v1194_v26, %v1186_v42  ;;  %v1067_v27 = vadd.f32 %v1065_v51, %v1057_v60  ;;  %v556_v28 = vpop.permute.xlu1 %555  ;;  %v416_v29 = vpop.permute.xlu0 %415 }
 0x13a   : > { %v557_v9 = vrot.slane %v556_v28, 7  ;;  %v417_v10 = vrot.slane %v416_v29, 7 }
 0x13c   : > { %v558_v16 = vsel %vm407_vm5, %v557_v9, %v556_v28  ;;  %v418_v17 = vsel %vm407_vm5, %v417_v10, %v416_v29 }
 0x13d   : > { %v816_v30 = vpop.permute.xlu1 %815  ;;  %v2346_v31 = vpop.permute.xlu0 %684  ;;  %v420_v24 = vadd.f32 %v418_v17, %v2332_v33 }
 0x13e   : > { %v817_v32 = vrot.slane %v816_v30, 7  ;;  %v686_v28 = vrot.slane %v2346_v31, 7 }
 0x140   : > { %v818_v34 = vsel %vm382_vm4, %v817_v32, %v816_v30 }
 0x141   : > { %v2349_v3 = vadd.f32 %v818_v34, %v810_v47  ;;  %v1073_v37 = vpop.permute.xlu1 %1072  ;;  %v944_v38 = vpop.permute.xlu0 %943 }
 0x142   : > { %v1074_v39 = vrot.slane %v1073_v37, 1  ;;  %v945_v40 = vrot.slane %v944_v38, 7 }
 0x144   : > { %v1075_v58 = vsel %vm361_vm3, %v1073_v37, %v1074_v39  ;;  %v946_v41 = vsel %vm382_vm4, %v945_v40, %v944_v38 }
 0x145   : > { %v2353_v43 = vadd.f32 %v1075_v58, %v1067_v27  ;;  %v2355_v44 = vadd.f32 %v946_v41, %v938_v21  ;;  %v426_v19 = vpop.permute.xlu1 %425  ;;  %v1202_v45 = vpop.permute.xlu0 %1201  ;;  %v550_v21 = vadd.f32 %v548_v11, %v2318_v35 }
 0x146   : > { %v1203_v46 = vrot.slane %v1202_v45, 1  ;;  %v427_v1 = vrot.slane %v426_v19, 7 }
 0x147   : > { %v560_v22 = vadd.f32 %v558_v16, %v550_v21 }
 0x148   : > { %v1204_v48 = vsel %vm361_vm3, %v1202_v45, %v1203_v46  ;;  %v429_v47 = vsel %vm428_vm6, %v427_v1, %v426_v19  ;;  %v687_v19 = vsel %vm407_vm5, %v686_v28, %v2346_v31 }
 0x149   : > { %v2358_v49 = vadd.f32 %v1204_v48, %v1196_v25  ;;  %v2360_v50 = vpop.permute.xlu1 %694  ;;  %v566_v53 = vpop.permute.xlu0 %565  ;;  %v431_v27 = vadd.f32 %v429_v47, %v420_v24  ;;  %v689_v9 = vadd.f32 %v687_v19, %v2339_v12 }
 0x14a   : > { %v567_v13 = vrot.slane %v566_v53, 7  ;;  %v696_v38 = vrot.slane %v2360_v50, 7 }
 0x14c   : > { %v568_v56 = vsel %vm428_vm6, %v567_v13, %v566_v53  ;;  %v697_v5 = vsel %vm407_vm5, %v696_v38, %v2360_v50 }
 0x14d   : > { %v2362_v54 = vpop.permute.xlu1 %953  ;;  %v2364_v57 = vpop.permute.xlu0 %825  ;;  %v570_v35 = vadd.f32 %v568_v56, %v560_v22  ;;  %v699_v11 = vadd.f32 %v697_v5, %v689_v9 }
 0x151   : > { %v2366_v36 = vpop.permute.xlu1 %1211  ;;  %v2368_v55 = vpop.permute.xlu0 %1082 }
 0x155   : > { %v576_v60 = vpop.permute.xlu1 %575  ;;  %v437_v61 = vpop.permute.xlu0 %436 }
 0x156   : > { %v577_v20 = vrot.slane %v576_v60, 7  ;;  %v438_v59 = vrot.slane %v437_v61, 7 }
 0x158   : > { %v578_v51 = vsel %vm428_vm6, %v577_v20, %v576_v60  ;;  %v439_v25 = vsel %vm428_vm6, %v438_v59, %v437_v61  ;;  %v827_v20 = vrot.slane %v2364_v57, 7 }
 0x159   : > { %v2370_v62 = vpop.permute.xlu1 %835  ;;  %v705_v63 = vpop.permute.xlu0 %704  ;;  %v580_v32 = vadd.f32 %v578_v51, %v570_v35  ;;  %v441_v34 = vadd.f32 %v439_v25, %v431_v27  ;;  %v1084_v27 = vrot.slane %v2368_v55, 7 }
 0x15a   : > { %v706_v45 = vrot.slane %v705_v63, 7  ;;  %v837_v47 = vrot.slane %v2370_v62, 7 }
 0x15c   : > { %v707_v31 = vsel %vm428_vm6, %v706_v45, %v705_v63  ;;  %v955_v63 = vrot.slane %v2362_v54, 7  ;;  %v838_v35 = vsel %vm407_vm5, %v837_v47, %v2370_v62 }
 0x15d   : > { %v2372_v0 = vpop.permute.xlu1 %1092  ;;  %v2374_v18 = vpop.permute.xlu0 %963  ;;  %v709_v17 = vadd.f32 %v707_v31, %v699_v11 }
 0x15e   : > { %v1094_v38 = vrot.slane %v2372_v0, 7 }
 0x161   : > { %v447_v52 = vpop.permute.xlu1 %446  ;;  %v2376_v4 = vpop.permute.xlu0 %1221 }
 0x162   : > { %v448_v6 = vrot.slane %v447_v52, 7 }
 0x164   : > { %v450_v29 = vsel %vm449_vm7, %v448_v6, %v447_v52 }
 0x165   : > { %v715_v7 = vpop.permute.xlu1 %714  ;;  %v586_v8 = vpop.permute.xlu0 %585  ;;  %v452_v58 = vadd.f32 %v450_v29, %v441_v34  ;;  %v956_v29 = vsel %vm382_vm4, %v955_v63, %v2362_v54  ;;  %v1085_v54 = vsel %vm382_vm4, %v1084_v27, %v2368_v55 }
 0x166   : > { %v587_v2 = vrot.slane %v586_v8, 7  ;;  %v1087_v55 = vadd.f32 %v1085_v54, %v2353_v43 }
 0x168   : > { %v588_v30 = vsel %vm449_vm7, %v587_v2, %v586_v8  ;;  %v716_v8 = vrot.slane %v715_v7, 7  ;;  %v828_v2 = vsel %vm407_vm5, %v827_v20, %v2364_v57  ;;  %v1213_v57 = vrot.slane %v2366_v36, 1 }
 0x169   : > { %v2381_v14 = vpop.permute.xlu1 %973  ;;  %v2383_v15 = vpop.permute.xlu0 %845  ;;  %v590_v41 = vadd.f32 %v588_v30, %v580_v32  ;;  %v830_v30 = vadd.f32 %v828_v2, %v2349_v3  ;;  %v965_v32 = vrot.slane %v2374_v18, 7 }
 0x16a   : > { %v717_v16 = vsel %vm428_vm6, %v716_v8, %v715_v7  ;;  %v847_v7 = vrot.slane %v2383_v15, 7  ;;  %v975_v3 = vrot.slane %v2381_v14, 7 }
 0x16b   : > { %v719_v59 = vadd.f32 %v717_v16, %v709_v17  ;;  %v966_v45 = vsel %vm407_vm5, %v965_v32, %v2374_v18 }
 0x16c   : > { %v848_v34 = vsel %vm428_vm6, %v847_v7, %v2383_v15  ;;  %v1214_v15 = vsel %vm361_vm3, %v2366_v36, %v1213_v57  ;;  %v976_v5 = vsel %vm407_vm5, %v975_v3, %v2381_v14 }
 0x16d   : > { %v2391_v42 = vpop.permute.xlu1 %1231  ;;  %v2393_v26 = vpop.permute.xlu0 %1102 }
 0x16e   : > { %v1104_v19 = vrot.slane %v2393_v26, 7  ;;  %v1233_v31 = vrot.slane %v2391_v42, 7 }
 0x170   : > { %v1105_v43 = vsel %vm407_vm5, %v1104_v19, %v2393_v26 }
 0x171   : > { %v596_v33 = vpop.permute.xlu1 %595  ;;  %v458_v37 = vpop.permute.xlu0 %457 }
 0x172   : > { %v597_v39 = vrot.slane %v596_v33, 7  ;;  %v459_v40 = vrot.slane %v458_v37, 7 }
 0x174   : > { %v598_v46 = vsel %vm449_vm7, %v597_v39, %v596_v33  ;;  %v460_v48 = vsel %vm449_vm7, %v459_v40, %v458_v37  ;;  %v840_v37 = vadd.f32 %v838_v35, %v830_v30 }
 0x175   : > { %v600_v53 = vadd.f32 %v598_v46, %v590_v41  ;;  %v462_v60 = vadd.f32 %v460_v48, %v452_v58  ;;  %v856_v61 = vpop.permute.xlu1 %855  ;;  %v725_v52 = vpop.permute.xlu0 %724  ;;  %v958_v58 = vadd.f32 %v956_v29, %v2355_v44 }
 0x176   : > { %v726_v10 = vrot.slane %v725_v52, 7  ;;  %v857_v28 = vrot.slane %v856_v61, 7  ;;  %v850_v41 = vadd.f32 %v848_v34, %v840_v37 }
 0x177   : > { %604 = vrot.lane.b32.xlu1 %v600_v53, %s1795_s15  ;;  %465 = vrot.lane.b32.xlu0 %v462_v60, %s1796_s1  ;;  %v1095_v53 = vsel %vm382_vm4, %v1094_v38, %v2372_v0  ;;  %v1223_v60 = vrot.slane %v2376_v4, 7  ;;  %v968_v9 = vadd.f32 %v966_v45, %v958_v58 }
 0x178   : > { %v727_v50 = vsel %vm449_vm7, %v726_v10, %v725_v52  ;;  %v858_v40 = vsel %vm428_vm6, %v857_v28, %v856_v61  ;;  %v1097_v20 = vadd.f32 %v1095_v53, %v1087_v55 }
 0x179   : > { %v2409_v1 = vpop.permute.xlu1 %1112  ;;  %v984_v13 = vpop.permute.xlu0 %983  ;;  %v729_v6 = vadd.f32 %v727_v50, %v719_v59  ;;  %v860_v44 = vadd.f32 %v858_v40, %v850_v41  ;;  %v978_v50 = vadd.f32 %v976_v5, %v968_v9 }
 0x17a   : > { %v985_v46 = vrot.slane %v984_v13, 7  ;;  %v1114_v36 = vrot.slane %v2409_v1, 7  ;;  %v1107_v2 = vadd.f32 %v1105_v43, %v1097_v20  ;;  %v602_v20 = vld [vmem:[#allocation8 + $0x1] ss:$8 sm:$0x3] }
 0x17c   : > { %v986_v0 = vsel %vm428_vm6, %v985_v46, %v984_v13  ;;  %v1115_v26 = vsel %vm407_vm5, %v1114_v36, %v2409_v1 }
 0x17d   : > { %v735_v12 = vpop.permute.xlu1 %734  ;;  %v2414_v21 = vpop.permute.xlu0 %1241  ;;  %v988_v7 = vadd.f32 %v986_v0, %v978_v50  ;;  %v1117_v35 = vadd.f32 %v1115_v26, %v1107_v2  ;;  %v882_v2 = vld [vmem:[#allocation8 + $0x3] ss:$8 sm:$0x3] }
 0x17e   : > { %v736_v56 = vrot.slane %v735_v12, 7  ;;  %v1243_v14 = vrot.slane %v2414_v21, 7 }
 0x180   : > { %v737_v22 = vsel %vm449_vm7, %v736_v56, %v735_v12  ;;  %v1224_v56 = vsel %vm382_vm4, %v1223_v60, %v2376_v4  ;;  %v1244_v1 = vsel %vm407_vm5, %v1243_v14, %v2414_v21  ;;  %v463_v14 = vld [vmem:[#allocation8] ss:$8 sm:$0x3] }
 0x181   : > { %v739_v24 = vadd.f32 %v737_v22, %v729_v6  ;;  %v994_v51 = vpop.permute.xlu1 %993  ;;  %v866_v25 = vpop.permute.xlu0 %865  ;;  %v1216_v6 = vadd.f32 %v1214_v15, %v2358_v49  ;;  %v1234_v22 = vsel %vm382_vm4, %v1233_v31, %v2391_v42 }
 0x182   : > { %v867_v33 = vrot.slane %v866_v25, 7  ;;  %v995_v8 = vrot.slane %v994_v51, 7 }
 0x183   : > { %743 = vrot.lane.b32.xlu0 %v739_v24, %s1797_s24  ;;  %v1226_v27 = vadd.f32 %v1224_v56, %v1216_v6  ;;  %v741_v56 = vld [vmem:[#allocation8 + $0x2] ss:$8 sm:$0x3] }
 0x184   : > { %v868_v48 = vsel %vm449_vm7, %v867_v33, %v866_v25  ;;  %v996_v63 = vsel %vm428_vm6, %v995_v8, %v994_v51 }
 0x185   : > { %v1252_v62 = vpop.permute.xlu1 %1251  ;;  %v1123_v39 = vpop.permute.xlu0 %1122  ;;  %v870_v10 = vadd.f32 %v868_v48, %v860_v44  ;;  %v998_v51 = vadd.f32 %v996_v63, %v988_v7  ;;  %v1236_v34 = vadd.f32 %v1234_v22, %v1226_v27 }
 0x186   : > { %v1124_v11 = vrot.slane %v1123_v39, 7  ;;  %v1253_v24 = vrot.slane %v1252_v62, 7 }
 0x187   : > { %v1246_v54 = vadd.f32 %v1244_v1, %v1236_v34  ;;  %v1298_v34 = vld [vmem:[#allocation8 + $0x6] ss:$8 sm:$0x3] }
 0x188   : > { %v1125_v25 = vsel %vm428_vm6, %v1124_v11, %v1123_v39  ;;  %v1254_v37 = vsel %vm407_vm5, %v1253_v24, %v1252_v62 }
 0x189   : > { %v1004_v61 = vpop.permute.xlu1 %1003  ;;  %v876_v52 = vpop.permute.xlu0 %875  ;;  %v1127_v42 = vadd.f32 %v1125_v25, %v1117_v35  ;;  %v1256_v45 = vadd.f32 %v1254_v37, %v1246_v54  ;;  %v1020_v25 = vld [vmem:[#allocation8 + $0x4] ss:$8 sm:$0x3]  ;;  %v1309_v54 = vstv %s1308_s9 }
 0x18a   : > { %v877_v18 = vrot.slane %v876_v52, 7  ;;  %v1005_v16 = vrot.slane %v1004_v61, 7 }
 0x18c   : > { %v878_v17 = vsel %vm449_vm7, %v877_v18, %v876_v52  ;;  %v1006_v4 = vsel %vm449_vm7, %v1005_v16, %v1004_v61 }
 0x18d   : > { %v880_v59 = vadd.f32 %v878_v17, %v870_v10  ;;  %v1262_v12 = vpop.permute.xlu1 %1261  ;;  %v1133_v47 = vpop.permute.xlu0 %1132  ;;  %v1008_v33 = vadd.f32 %v1006_v4, %v998_v51  ;;  %v1159_v51 = vld [vmem:[#allocation8 + $0x5] ss:$8 sm:$0x3] }
 0x18e   : > { %v1134_v13 = vrot.slane %v1133_v47, 7  ;;  %v1263_v29 = vrot.slane %v1262_v12, 7 }
 0x18f   : > { %884 = vrot.lane.b32.xlu1 %v880_v59, %s2557_s12  ;;  %s1798_s12 = smov 47  }
 0x190   : > { %v1135_v30 = vsel %vm428_vm6, %v1134_v13, %v1133_v47  ;;  %v1264_v41 = vsel %vm428_vm6, %v1263_v29, %v1262_v12 }
 0x191   : > { %v1143_v28 = vpop.permute.xlu1 %1142  ;;  %v1014_v49 = vpop.permute.xlu0 %1013  ;;  %v1137_v3 = vadd.f32 %v1135_v30, %v1127_v42  ;;  %v1266_v55 = vadd.f32 %v1264_v41, %v1256_v45  ;;  %v1324_v45 = vsub.s32 1, %v1969_v23 }
 0x192   : > { %v1144_v57 = vrot.slane %v1143_v28, 7  ;;  %v1015_v32 = vrot.slane %v1014_v49, 7 }
 0x194   : > { %v1145_v38 = vsel %vm449_vm7, %v1144_v57, %v1143_v28  ;;  %v1016_v39 = vsel %vm449_vm7, %v1015_v32, %v1014_v49 }
 0x195   : > { %v1018_v21 = vadd.f32 %v1016_v39, %v1008_v33  ;;  %v1153_v40 = vpop.permute.xlu1 %1152  ;;  %v1272_v58 = vpop.permute.xlu0 %1271  ;;  %v1147_v46 = vadd.f32 %v1145_v38, %v1137_v3 }
 0x196   : > { %v1154_v19 = vrot.slane %v1153_v40, 7  ;;  %v1273_v15 = vrot.slane %v1272_v58, 7 }
 0x197   : > { %1022 = vrot.lane.b32.xlu0 %v1018_v21, %s1798_s12 }
 0x198   : > { %v1155_v48 = vsel %vm449_vm7, %v1154_v19, %v1153_v40  ;;  %v1274_v62 = vsel %vm428_vm6, %v1273_v15, %v1272_v58  ;;  %v1320_v15 = vsub.s32 0, %v1969_v23 }
 0x199   : > { %v1157_v53 = vadd.f32 %v1155_v48, %v1147_v46  ;;  %v1292_v60 = vpop.permute.xlu1 %1291  ;;  %v1282_v44 = vpop.permute.xlu0 %1281  ;;  %v1276_v5 = vadd.f32 %v1274_v62, %v1266_v55 }
 0x19a   : > { %v1293_v61 = vrot.slane %v1292_v60, 7  ;;  %v1283_v52 = vrot.slane %v1282_v44, 7 }
 0x19b   : > { %1161 = vrot.lane.b32.xlu1 %v1157_v53, %s1799_s27  ;;  %v1640_v53 = vld [vmem:[%s1954_s8] sm:$0xff] }
 0x19c   : > { %v1284_v36 = vsel %vm449_vm7, %v1283_v52, %v1282_v44  ;;  %v1294_v18 = vsel %vm449_vm7, %v1293_v61, %v1292_v60 }
 0x19d   : > { %v1286_v8 = vadd.f32 %v1284_v36, %v1276_v5 }
 0x19f   : > { %v1296_v9 = vadd.f32 %v1294_v18, %v1286_v8 }
 0x1a1   : > { %1300 = vrot.lane.b32.xlu0 %v1296_v9, %s1800_s29 }
 0x1e9   : > { %v466_v31 = vpop.permute.xlu0 %465  ;;  %v605_v43 = vpop.permute.xlu1 %604 }
 0x1ea   : > { %v606_v0 = vrot.slane %v605_v43, 1  ;;  %v467_v11 = vrot.slane %v466_v31, 1 }
 0x1ec   : > { %v608_v50 = vsel %vm607_vm8, %v605_v43, %v606_v0  ;;  %v469_v59 = vsel %vm468_vm9, %v466_v31, %v467_v11 }
 0x1ed   : > { %v610_v13 = vmul.f32 %v608_v50, %v602_v20  ;;  %v471_v6 = vmul.f32 %v469_v59, %v463_v14 }
 0x1ef   : > { %v611_v35 = vadd.f32 %v610_v13, %v471_v6 }
 0x1f5   : > { %v744_v10 = vpop.permute.xlu0 %743 }
 0x1f6   : > { %v745_v17 = vrot.slane %v744_v10, 1 }
 0x1f8   : > { %v747_v26 = vsel %vm746_vm10, %v744_v10, %v745_v17 }
 0x1f9   : > { %v749_v22 = vmul.f32 %v747_v26, %v741_v56 }
 0x1fb   : > { %v750_v49 = vadd.f32 %v749_v22, %v611_v35 }
 0x201   : > { %v885_v16 = vpop.permute.xlu1 %884 }
 0x202   : > { %v886_v12 = vrot.slane %v885_v16, 1 }
 0x204   : > { %v887_v7 = vsel %vm428_vm6, %v885_v16, %v886_v12 }
 0x205   : > { %v889_v1 = vmul.f32 %v887_v7, %v882_v2 }
 0x207   : > { %v890_v30 = vadd.f32 %v889_v1, %v750_v49 }
 0x209   : > { %v1023_v47 = vpop.permute.xlu0 %1022 }
 0x20a   : > { %v1024_v63 = vrot.slane %v1023_v47, 1 }
 0x20c   : > { %v1026_v4 = vsel %vm1025_vm11, %v1023_v47, %v1024_v63 }
 0x20d   : > { %v1162_v24 = vpop.permute.xlu1 %1161  ;;  %v1028_v29 = vmul.f32 %v1026_v4, %v1020_v25 }
 0x20e   : > { %v1163_v27 = vrot.slane %v1162_v24, 1 }
 0x20f   : > { %v1029_v33 = vadd.f32 %v1028_v29, %v890_v30 }
 0x210   : > { %v1165_v28 = vsel %vm1164_vm12, %v1162_v24, %v1163_v27 }
 0x211   : > { %v1167_v57 = vmul.f32 %v1165_v28, %v1159_v51 }
 0x213   : > { %v1301_v32 = vpop.permute.xlu0 %1300  ;;  %v1168_v38 = vadd.f32 %v1167_v57, %v1029_v33 }
 0x214   : > { %v1302_v42 = vrot.slane %v1301_v32, 1 }
 0x216   : > { %v1304_v37 = vsel %vm1303_vm13, %v1301_v32, %v1302_v42 }
 0x217   : > { %v1306_v39 = vmul.f32 %v1304_v37, %v1298_v34 }
 0x219   : > { %v1307_v3 = vadd.f32 %v1306_v39, %v1168_v38 }
 0x21b   : > { %v1310_v21 = vadd.f32 %v1309_v54, %v1307_v3 }
 0x21d   : > { %v1311_v40 = vsub.f32 0.0, %v1310_v21 }
 0x21f   : > { %v1312_v58 = vmul.f32 1.442695, %v1311_v40 }
 0x221   : > { %1636 = vpow2.f32 %v1312_v58 }
 0x22e   : > { %v1637_v41 = vpop.eup %1636 }
 0x22f   : > { %v1314_v19 = vadd.f32 1.0, %v1637_v41 }
 0x231   : > { %1638 = vrcp.f32 %v1314_v19 }
 0x23e   : > { %v1639_v46 = vpop.eup %1638 }
 0x23f   : > { %v1321_v48 = vrot.slane %v1639_v46, %v1320_v15  ;;  %v1325_v62 = vrot.slane %v1639_v46, %v1324_v45 }
 0x241   : > { %v1326_v55 = vcombine.low %v1321_v48, %v1325_v62 }
 0x243   : > { %v1328_v60 = vmul.f32 %v1640_v53, %v1326_v55 }
 0x245   : > { %1329 = vst [vmem:[%s241_s0] sm:$0xff] %v1328_v60 }
 0x246   : > { %1723 = shalt.err (!%p1720_p7)
}
 0x247   : > { %s1724_s8 = scalar_lea.hbm %s1343_s11, 128  ;;  %s1728_s16 = scalar_lea.hbm %s2524_s4, 256 }
 0x248   : > { %p1725_p10 = scmp.ne.s32.totalorder %s1343_s11, %s1724_s8  ;;  %p1729_p5 = scmp.lt.s32.totalorder %s1343_s11, %s2524_s4 }
 0x249   : > { %p1730_p13 = scmp.lt.s32.totalorder %s1728_s16, %s1724_s8 }
 0x24a   : > { %p1726_p8 = pnand %p1725_p10, %p2562_p2 }
 0x24b   : > { %p1731_p0 = por %p1730_p13, %p1729_p5 }
 0x24c   : > { %p1727_p11 = pneg %p1726_p8 }
 0x24e   : > { %p1732_p1 = pnand %p1731_p0, %p1727_p11 }
 0x250   : > { %1735 = shalt.err (!%p1732_p1)
}
 0x251   : > { %1564 = dma.vmem_to_hbm [thread:$0]  (%p2562_p2), %s1346_s13, 128, %s1343_s11, %s1331_s25  }
 0x252 PF: > { %s1357_s24 = sand.u32 1, %s1770_s17   ;;  %p2563_p9 = scmp.ne.s32.totalorder %s2541_s23, 0 }
 0x253   : > { %p2564_p4 = scmp.ge.s32.totalorder %s1782_s20, 2  ;;  %s1358_s12 = scalar_lea.sflag [#allocation6], %s1357_s24 }
 0x255   : > { %p1578_p6 = pnand %p2564_p4, %p2563_p9 }
 0x257   : > { %p1579_p12 = pneg %p1578_p6 }
 0x259   : > { %1765 = dma.done.wait (%p1579_p12), %s1358_s12, 128  }
 0x25a   : > { %1767 = vsyncadd (%p1579_p12), %s1358_s12, 4294967168  ;;  %s2565_s27 = sld [smem:[#allocation16_spill]]  ;;  %p20_p3 = scmp.ge.s32.totalorder %s1887_s5, 4  }
 0x25b   : > { %s2566_s17 = smov %s1774_s18  ;;  %s2567_s18 = smov %s1778_s19 }
 0x25c   : > { %s2569_s20 = smov %s1887_s5  ;;  %22 = sbr.rel (!%p20_p3) target bundleno = 12 (0xc), region = 101 }
 0x260   : > { %s2568_s19 = smov %s2565_s27 }
 0x261   :  { %1363 = vsyncpa [#allocation5], 1 }
 0x262   :  { %1365 = vsyncpa [#allocation5 + $0x1], 1 }
 0x263   :  { %1366 = vsyncpa [#allocation9], 1 }
 0x264   :  { %1367 = vsyncpa [#allocation6], 1 }
 0x265   :  { %1369 = vsyncpa [#allocation6 + $0x1], 1 }
 0x266   :  { %1370 = vsyncpa [#allocation7], 1 }
 0x267   :  { %1372 = vsyncpa [#allocation7 + $0x1], 1 }

</bundles_post_ra>
